<compile_context>
chip_gen: v7x
topology: tpu7x:2x2x1
jax: 0.10.0
libtpu: 0.0.40
codegen_flags: <defaults>
</compile_context>

<pallas_src>
import jax
import jax.numpy as jnp
from jax import lax
from jax.experimental import pallas as pl
from jax.experimental.pallas import tpu as pltpu

EPS = 1e-20       # module eps
BN_EPS = 1e-5     # nn.BatchNorm1d default eps


def _plan_hw_tiling(hw, max_tile=1024):
    """Return (hw_pad, tile): tile is a multiple of 8, tile <= max_tile,
    hw_pad % tile == 0 and hw_pad >= hw (rows beyond hw are zero-padded)."""
    max_tile -= max_tile % 8
    if hw <= max_tile:
        t = ((hw + 7) // 8) * 8
        return t, t
    hw8 = ((hw + 7) // 8) * 8
    # largest multiple-of-8 tile <= max_tile that exactly divides padded HW
    for t in range(max_tile, 7, -8):
        if hw8 % t == 0:
            return hw8, t
    hw_pad = ((hw + max_tile - 1) // max_tile) * max_tile
    return hw_pad, max_tile


# --------------------------------------------------------------------------
# Pallas kernel 1: SAFF spatial/channel-weighted aggregation (streaming pass)
#   s_row  = sum_c(x)                       (per spatial position)
#   denom  = sum_hw sqrt(s_row)
#   x_s    = sum_hw( sqrt(s_row) * x ) * rsqrt(denom + eps)
#   omega  = mean_hw (x > 0)
#   wk     = log((C*eps + sum_c omega) / (eps + omega) + eps)
#   out    = x_s * wk
# Inputs are three channels-last (B, HW, C_i) feature maps (bf16 or f32);
# accumulation is f32.  Zero-padded HW rows contribute nothing.
# --------------------------------------------------------------------------
def saff_aggregate(c3, c4, c5, *, max_tile=1024):
    B, HW = c3.shape[0], c3.shape[1]
    c_sizes = (c3.shape[-1], c4.shape[-1], c5.shape[-1])
    C = sum(c_sizes)
    off1, off2 = c_sizes[0], c_sizes[0] + c_sizes[1]   # lane-aligned (mult 128)

    hw_pad, tile_hw = _plan_hw_tiling(HW, max_tile)
    if hw_pad != HW:
        pad = ((0, 0), (0, hw_pad - HW), (0, 0))
        c3 = jnp.pad(c3, pad)
        c4 = jnp.pad(c4, pad)
        c5 = jnp.pad(c5, pad)
    n_tiles = hw_pad // tile_hw
    inv_hw = 1.0 / float(HW)                            # true HW, not padded

    def kernel(x3_ref, x4_ref, x5_ref, o_ref, denom_acc, vsum_acc, cnt_acc):
        t = pl.program_id(1)

        @pl.when(t == 0)
        def _init():
            denom_acc[...] = jnp.zeros_like(denom_acc)
            vsum_acc[...] = jnp.zeros_like(vsum_acc)
            cnt_acc[...] = jnp.zeros_like(cnt_acc)

        # Per-input loads (bf16 -> f32); no 1280-wide concat copy in VMEM.
        x3 = x3_ref[...].astype(jnp.float32)
        x4 = x4_ref[...].astype(jnp.float32)
        x5 = x5_ref[...].astype(jnp.float32)

        s_row = (jnp.sum(x3, axis=-1, keepdims=True)
                 + jnp.sum(x4, axis=-1, keepdims=True)
                 + jnp.sum(x5, axis=-1, keepdims=True))        # (tile_hw, 1)
        r = jnp.sqrt(s_row)                                    # >=0 (post-ReLU)

        def fold8(v):
            # (tile_hw, N) -> (8, N): pure vreg-wise VALU adds (tile_hw % 8 == 0)
            return v.reshape(tile_hw // 8, 8, v.shape[-1]).sum(axis=0)

        denom_acc[...] += fold8(r)                             # (8, 1)
        vsum_acc[:, 0:off1] += fold8(r * x3)
        vsum_acc[:, off1:off2] += fold8(r * x4)
        vsum_acc[:, off2:C] += fold8(r * x5)
        cnt_acc[:, 0:off1] += fold8((x3 > 0.0).astype(jnp.float32))
        cnt_acc[:, off1:off2] += fold8((x4 > 0.0).astype(jnp.float32))
        cnt_acc[:, off2:C] += fold8((x5 > 0.0).astype(jnp.float32))

        @pl.when(t == pl.num_programs(1) - 1)
        def _finalize():
            denom = jnp.sum(denom_acc[...], axis=0, keepdims=True)   # (1, 1)
            vsum = jnp.sum(vsum_acc[...], axis=0, keepdims=True)     # (1, C)
            cnt = jnp.sum(cnt_acc[...], axis=0, keepdims=True)       # (1, C)
            # sqrt(s/(denom+eps)) == sqrt(s) * rsqrt(denom+eps)
            x_s = vsum * lax.rsqrt(denom + EPS)
            omega = cnt * inv_hw
            omega_sum = jnp.sum(omega, axis=-1, keepdims=True)
            # Exact divide (runs once per image; approx reciprocal dropped).
            wk = jnp.log((float(C) * EPS + omega_sum) / (EPS + omega) + EPS)
            o_ref[0] = x_s * wk

    out = pl.pallas_call(
        kernel,
        out_shape=jax.ShapeDtypeStruct((B, 1, C), jnp.float32),
        grid_spec=pltpu.PrefetchScalarGridSpec(
            num_scalar_prefetch=0,
            grid=(B, n_tiles),
            in_specs=[
                pl.BlockSpec((None, tile_hw, c_sizes[0]), lambda b, t: (b, t, 0)),
                pl.BlockSpec((None, tile_hw, c_sizes[1]), lambda b, t: (b, t, 0)),
                pl.BlockSpec((None, tile_hw, c_sizes[2]), lambda b, t: (b, t, 0)),
            ],
            out_specs=pl.BlockSpec((1, 1, C), lambda b, t: (b, 0, 0)),
            scratch_shapes=[
                pltpu.VMEM((8, 1), jnp.float32),   # partial sum_hw sqrt(sum_c x)
                pltpu.VMEM((8, C), jnp.float32),   # partial sum_hw sqrt(.)*x
                pltpu.VMEM((8, C), jnp.float32),   # partial sum_hw (x > 0)
            ],
        ),
        compiler_params=pltpu.CompilerParams(
            dimension_semantics=("parallel", "arbitrary"),
            vmem_limit_bytes=48 * 1024 * 1024),
    )(c3, c4, c5)
    return out.reshape(B, C)


# --------------------------------------------------------------------------
# Pallas kernel 2: head — fc2(relu(fc1(BatchNorm1d(x))))
#   BN in training mode (batch statistics, biased variance) in f32;
#   fc1/fc2 in bf16 on the MXU with f32 accumulation; lane-dense output
#   (weights pre-padded to a 128-wide output outside the hot path).
# --------------------------------------------------------------------------
def saff_head_kernel(x_ref, gamma_ref, beta_ref, w1_ref, b1_ref, w2_ref,
                     b2_ref, o_ref):
    # TODO(synk): eval-mode parity would use running_mean/running_var; the
    # module is exercised in training mode here (batch statistics).
    x = x_ref[...]                                                # (B, 1280) f32
    mean = jnp.mean(x, axis=0, keepdims=True)
    var = jnp.mean((x - mean) ** 2, axis=0, keepdims=True)        # biased var
    xn = (x - mean) * lax.rsqrt(var + BN_EPS)
    xn = xn * gamma_ref[...] + beta_ref[...]
    h = jnp.dot(xn.astype(jnp.bfloat16), w1_ref[...],
                preferred_element_type=jnp.float32) + b1_ref[...]
    h = jnp.maximum(h, 0.0)                                       # ReLU
    o_ref[...] = (jnp.dot(h.astype(jnp.bfloat16), w2_ref[...],
                          preferred_element_type=jnp.float32) + b2_ref[...])


def saff_head(feats, gamma, beta, w1_bf16, b1, w2_pad_bf16, b2_pad):
    B = feats.shape[0]
    nc_pad = w2_pad_bf16.shape[-1]
    vmem = pl.BlockSpec(memory_space=pltpu.MemorySpace.VMEM)
    return pl.pallas_call(
        saff_head_kernel,
        out_shape=jax.ShapeDtypeStruct((B, nc_pad), jnp.float32),
        in_specs=[vmem] * 7,
        out_specs=vmem,
    )(feats, gamma, beta, w1_bf16, b1, w2_pad_bf16, b2_pad)


def prepare_head_params(w1, b1, w2, b2):
    """One-time padding / bf16 casting of head weights (hoisted out of jit)."""
    dim, nc = w2.shape
    nc_pad = ((nc + 127) // 128) * 128
    w2p = jnp.zeros((dim, nc_pad), jnp.bfloat16).at[:, :nc].set(
        w2.astype(jnp.bfloat16))
    b2p = jnp.zeros((1, nc_pad), jnp.float32).at[:, :nc].set(b2)
    return dict(w1_bf16=w1.astype(jnp.bfloat16), b1=b1,
                w2_pad_bf16=w2p, b2_pad=b2p)


# --------------------------------------------------------------------------
# Glue: backbone stand-in (channels-last, bf16), max-pooling, forward.
# --------------------------------------------------------------------------
def maxpool_nhwc(x, k):
    # nn.MaxPool2d(k, k): non-overlapping windows, channels-last.
    B, H, W, C = x.shape
    return x.reshape(B, H // k, k, W // k, k, C).max(axis=(2, 4))


def standin_backbone(x, key):
    # TODO(synk): VGGNet is an external class not given in the module source;
    # replaced by a deterministic avg-pool + 1x1-projection + ReLU stand-in
    # reproducing VGG16's feature shapes (256@H/8, 512@H/16, 512@H/32),
    # emitted channels-last in bf16 so the aggregation streams half the bytes.
    B, Cin, H, W = x.shape
    keys = jax.random.split(key, 3)

    def block(k, stride, cout):
        xp = x.reshape(B, Cin, H // stride, stride,
                       W // stride, stride).mean(axis=(3, 5))      # (B,Cin,h,w)
        w = jax.random.normal(k, (Cin, cout), jnp.float32) * 0.5
        y = jax.nn.relu(jnp.einsum('bchw,co->bhwo', xp, w))        # (B,h,w,cout)
        return y.astype(jnp.bfloat16)

    c3 = block(keys[0], 8, 256)     # backbone[:17](x)
    c4 = block(keys[1], 16, 512)    # backbone[:24](x)
    c5 = block(keys[2], 32, 512)    # backbone(x)
    return c3, c4, c5


def saff_forward(x, params, *, num_classes):
    c3, c4, c5 = standin_backbone(x, params["backbone_key"])
    c3 = maxpool_nhwc(c3, 4)                      # self.pool1
    c4 = maxpool_nhwc(c4, 2)                      # self.pool2
    B, h, w, _ = c5.shape
    agg = saff_aggregate(c3.reshape(B, h * w, -1),
                         c4.reshape(B, h * w, -1),
                         c5.reshape(B, h * w, -1))                 # (B, 1280) f32
    out = saff_head(agg, params["gamma"], params["beta"],
                    params["w1_bf16"], params["b1"],
                    params["w2_pad_bf16"], params["b2_pad"])
    return out[:, :num_classes]


if __name__ == "__main__":
    key = jax.random.PRNGKey(0)
    k_img, k_bb, k_w1, k_b1, k_w2, k_b2 = jax.random.split(key, 6)

    B, H, W = 2, 64, 64          # NCHW image input, small spatial size
    dim, num_classes = 128, 10   # SAFF(dim=128, num_classes=10)

    x = jax.random.uniform(k_img, (B, 3, H, W), jnp.float32)

    # nn.Linear weights stored transposed as (in, out).
    w1 = jax.random.normal(k_w1, (1280, dim), jnp.float32) / jnp.sqrt(1280.0)
    b1 = jax.random.normal(k_b1, (1, dim), jnp.float32) * 0.01
    w2 = jax.random.normal(k_w2, (dim, num_classes), jnp.float32) / jnp.sqrt(float(dim))
    b2 = jax.random.normal(k_b2, (1, num_classes), jnp.float32) * 0.01

    params = dict(
        backbone_key=k_bb,
        # nn.BatchNorm1d(1280): gamma=1, beta=0 (default init)
        gamma=jnp.ones((1, 1280), jnp.float32),
        beta=jnp.zeros((1, 1280), jnp.float32),
        **prepare_head_params(w1, b1, w2, b2),   # padded / bf16 weights, once
    )

    forward = jax.jit(saff_forward, static_argnames=("num_classes",))
    out = forward(x, params, num_classes=num_classes)
    jax.block_until_ready(out)

    assert out.shape == (B, num_classes)
    assert bool(jnp.all(jnp.isfinite(out)))
    print("KERNEL_OK")
</pallas_src>

<mosaic_0001>
module attributes {stable_mosaic.version = 11 : i64} {
  func.func @kernel(%arg0: i32, %arg1: i32, %arg2: memref<1x8x256xbf16, #tpu.memory_space<vmem>>, %arg3: memref<1x8x512xbf16, #tpu.memory_space<vmem>>, %arg4: memref<1x8x512xbf16, #tpu.memory_space<vmem>>, %arg5: memref<1x1x1280xf32, #tpu.memory_space<vmem>>, %arg6: memref<8x1xf32, #tpu.memory_space<vmem>>, %arg7: memref<8x1280xf32, #tpu.memory_space<vmem>>, %arg8: memref<8x1280xf32, #tpu.memory_space<vmem>>) attributes {dimension_semantics = [#tpu.dimension_semantics<parallel>, #tpu.dimension_semantics<arbitrary>], iteration_bounds = array<i64: 2, 1>, scalar_prefetch = 0 : i64, scratch_operands = 3 : i64, tpu.core_type = #tpu.core_type<tc>, window_params = [{transform_indices = @transform_0, window_bounds = array<i64: 1, 8, 256>}, {transform_indices = @transform_1, window_bounds = array<i64: 1, 8, 512>}, {transform_indices = @transform_2, window_bounds = array<i64: 1, 8, 512>}, {transform_indices = @transform_3, window_bounds = array<i64: 1, 1, 1280>}]} {
    %c0_i32 = arith.constant 0 : i32
    %0 = arith.cmpi eq, %arg1, %c0_i32 : i32
    %1 = arith.extui %0 : i1 to i32
    %c0_i32_0 = arith.constant 0 : i32
    %2 = arith.cmpi ne, %1, %c0_i32_0 : i32
    scf.if %2 {
      %cst_49 = arith.constant 0.000000e+00 : f32
      %77 = vector.broadcast %cst_49 : f32 to vector<8x1xf32>
      %c0_50 = arith.constant 0 : index
      %c0_51 = arith.constant 0 : index
      %78 = vector.load %arg6[%c0_50, %c0_51] : memref<8x1xf32, #tpu.memory_space<vmem>>, vector<8x1xf32>
      tpu.vector_store %arg6[%c0_50, %c0_51], %77 {strides = array<i32>} : memref<8x1xf32, #tpu.memory_space<vmem>>, vector<8x1xf32>,
      %cst_52 = arith.constant 0.000000e+00 : f32
      %79 = vector.broadcast %cst_52 : f32 to vector<8x1280xf32>
      %c0_53 = arith.constant 0 : index
      %c0_54 = arith.constant 0 : index
      %80 = vector.load %arg7[%c0_53, %c0_54] : memref<8x1280xf32, #tpu.memory_space<vmem>>, vector<8x1280xf32>
      tpu.vector_store %arg7[%c0_53, %c0_54], %79 {strides = array<i32>} : memref<8x1280xf32, #tpu.memory_space<vmem>>, vector<8x1280xf32>,
      %cst_55 = arith.constant 0.000000e+00 : f32
      %81 = vector.broadcast %cst_55 : f32 to vector<8x1280xf32>
      %c0_56 = arith.constant 0 : index
      %c0_57 = arith.constant 0 : index
      %82 = vector.load %arg8[%c0_56, %c0_57] : memref<8x1280xf32, #tpu.memory_space<vmem>>, vector<8x1280xf32>
      tpu.vector_store %arg8[%c0_56, %c0_57], %81 {strides = array<i32>} : memref<8x1280xf32, #tpu.memory_space<vmem>>, vector<8x1280xf32>,
    } else {
    }
    %c0 = arith.constant 0 : index
    %c0_1 = arith.constant 0 : index
    %c0_2 = arith.constant 0 : index
    %3 = vector.load %arg2[%c0, %c0_1, %c0_2] : memref<1x8x256xbf16, #tpu.memory_space<vmem>>, vector<1x8x256xbf16>
    %4 = vector.shape_cast %3 : vector<1x8x256xbf16> to vector<8x256xbf16>
    %5 = arith.extf %4 : vector<8x256xbf16> to vector<8x256xf32>
    %c0_3 = arith.constant 0 : index
    %c0_4 = arith.constant 0 : index
    %c0_5 = arith.constant 0 : index
    %6 = vector.load %arg3[%c0_3, %c0_4, %c0_5] : memref<1x8x512xbf16, #tpu.memory_space<vmem>>, vector<1x8x512xbf16>
    %7 = vector.shape_cast %6 : vector<1x8x512xbf16> to vector<8x512xbf16>
    %8 = arith.extf %7 : vector<8x512xbf16> to vector<8x512xf32>
    %c0_6 = arith.constant 0 : index
    %c0_7 = arith.constant 0 : index
    %c0_8 = arith.constant 0 : index
    %9 = vector.load %arg4[%c0_6, %c0_7, %c0_8] : memref<1x8x512xbf16, #tpu.memory_space<vmem>>, vector<1x8x512xbf16>
    %10 = vector.shape_cast %9 : vector<1x8x512xbf16> to vector<8x512xbf16>
    %11 = arith.extf %10 : vector<8x512xbf16> to vector<8x512xf32>
    %cst = arith.constant dense<0.000000e+00> : vector<8xf32>
    %12 = vector.multi_reduction <add>, %5, %cst [1] : vector<8x256xf32> to vector<8xf32>
    %13 = vector.shape_cast %12 : vector<8xf32> to vector<8x1xf32>
    %cst_9 = arith.constant dense<0.000000e+00> : vector<8xf32>
    %14 = vector.multi_reduction <add>, %8, %cst_9 [1] : vector<8x512xf32> to vector<8xf32>
    %15 = vector.shape_cast %14 : vector<8xf32> to vector<8x1xf32>
    %16 = arith.addf %13, %15 : vector<8x1xf32>
    %cst_10 = arith.constant dense<0.000000e+00> : vector<8xf32>
    %17 = vector.multi_reduction <add>, %11, %cst_10 [1] : vector<8x512xf32> to vector<8xf32>
    %18 = vector.shape_cast %17 : vector<8xf32> to vector<8x1xf32>
    %19 = arith.addf %16, %18 : vector<8x1xf32>
    %20 = math.sqrt %19 : vector<8x1xf32>
    %c0_11 = arith.constant 0 : index
    %c0_12 = arith.constant 0 : index
    %21 = vector.load %arg6[%c0_11, %c0_12] : memref<8x1xf32, #tpu.memory_space<vmem>>, vector<8x1xf32>
    %22 = vector.shape_cast %20 : vector<8x1xf32> to vector<1x8x1xf32>
    %cst_13 = arith.constant dense<0.000000e+00> : vector<8x1xf32>
    %23 = vector.multi_reduction <add>, %22, %cst_13 [0] : vector<1x8x1xf32> to vector<8x1xf32>
    %24 = arith.addf %21, %23 : vector<8x1xf32>
    %c0_14 = arith.constant 0 : index
    %c0_15 = arith.constant 0 : index
    %25 = vector.load %arg6[%c0_14, %c0_15] : memref<8x1xf32, #tpu.memory_space<vmem>>, vector<8x1xf32>
    tpu.vector_store %arg6[%c0_14, %c0_15], %24 {strides = array<i32>} : memref<8x1xf32, #tpu.memory_space<vmem>>, vector<8x1xf32>,
    %c0_16 = arith.constant 0 : index
    %c0_17 = arith.constant 0 : index
    %26 = vector.load %arg7[%c0_16, %c0_17] : memref<8x1280xf32, #tpu.memory_space<vmem>>, vector<8x256xf32>
    %27 = vector.broadcast %20 : vector<8x1xf32> to vector<8x256xf32>
    %28 = arith.mulf %27, %5 : vector<8x256xf32>
    %29 = vector.shape_cast %28 : vector<8x256xf32> to vector<1x8x256xf32>
    %cst_18 = arith.constant dense<0.000000e+00> : vector<8x256xf32>
    %30 = vector.multi_reduction <add>, %29, %cst_18 [0] : vector<1x8x256xf32> to vector<8x256xf32>
    %31 = arith.addf %26, %30 : vector<8x256xf32>
    %c0_19 = arith.constant 0 : index
    %c0_20 = arith.constant 0 : index
    %32 = vector.load %arg7[%c0_19, %c0_20] : memref<8x1280xf32, #tpu.memory_space<vmem>>, vector<8x256xf32>
    tpu.vector_store %arg7[%c0_19, %c0_20], %31 {strides = array<i32>} : memref<8x1280xf32, #tpu.memory_space<vmem>>, vector<8x256xf32>,
    %c0_21 = arith.constant 0 : index
    %c256 = arith.constant 256 : index
    %33 = vector.load %arg7[%c0_21, %c256] : memref<8x1280xf32, #tpu.memory_space<vmem>>, vector<8x512xf32>
    %34 = vector.broadcast %20 : vector<8x1xf32> to vector<8x512xf32>
    %35 = arith.mulf %34, %8 : vector<8x512xf32>
    %36 = vector.shape_cast %35 : vector<8x512xf32> to vector<1x8x512xf32>
    %cst_22 = arith.constant dense<0.000000e+00> : vector<8x512xf32>
    %37 = vector.multi_reduction <add>, %36, %cst_22 [0] : vector<1x8x512xf32> to vector<8x512xf32>
    %38 = arith.addf %33, %37 : vector<8x512xf32>
    %c0_23 = arith.constant 0 : index
    %c256_24 = arith.constant 256 : index
    %39 = vector.load %arg7[%c0_23, %c256_24] : memref<8x1280xf32, #tpu.memory_space<vmem>>, vector<8x512xf32>
    tpu.vector_store %arg7[%c0_23, %c256_24], %38 {strides = array<i32>} : memref<8x1280xf32, #tpu.memory_space<vmem>>, vector<8x512xf32>,
    %c0_25 = arith.constant 0 : index
    %c768 = arith.constant 768 : index
    %40 = vector.load %arg7[%c0_25, %c768] : memref<8x1280xf32, #tpu.memory_space<vmem>>, vector<8x512xf32>
    %41 = vector.broadcast %20 : vector<8x1xf32> to vector<8x512xf32>
    %42 = arith.mulf %41, %11 : vector<8x512xf32>
    %43 = vector.shape_cast %42 : vector<8x512xf32> to vector<1x8x512xf32>
    %cst_26 = arith.constant dense<0.000000e+00> : vector<8x512xf32>
    %44 = vector.multi_reduction <add>, %43, %cst_26 [0] : vector<1x8x512xf32> to vector<8x512xf32>
    %45 = arith.addf %40, %44 : vector<8x512xf32>
    %c0_27 = arith.constant 0 : index
    %c768_28 = arith.constant 768 : index
    %46 = vector.load %arg7[%c0_27, %c768_28] : memref<8x1280xf32, #tpu.memory_space<vmem>>, vector<8x512xf32>
    tpu.vector_store %arg7[%c0_27, %c768_28], %45 {strides = array<i32>} : memref<8x1280xf32, #tpu.memory_space<vmem>>, vector<8x512xf32>,
    %c0_29 = arith.constant 0 : index
    %c0_30 = arith.constant 0 : index
    %47 = vector.load %arg8[%c0_29, %c0_30] : memref<8x1280xf32, #tpu.memory_space<vmem>>, vector<8x256xf32>
    %cst_31 = arith.constant 0.000000e+00 : f32
    %48 = vector.broadcast %cst_31 : f32 to vector<8x256xf32>
    %49 = arith.cmpf ogt, %5, %48 : vector<8x256xf32>
    %50 = arith.extui %49 : vector<8x256xi1> to vector<8x256xi32>
    %51 = arith.sitofp %50 : vector<8x256xi32> to vector<8x256xf32>
    %52 = vector.shape_cast %51 : vector<8x256xf32> to vector<1x8x256xf32>
    %cst_32 = arith.constant dense<0.000000e+00> : vector<8x256xf32>
    %53 = vector.multi_reduction <add>, %52, %cst_32 [0] : vector<1x8x256xf32> to vector<8x256xf32>
    %54 = arith.addf %47, %53 : vector<8x256xf32>
    %c0_33 = arith.constant 0 : index
    %c0_34 = arith.constant 0 : index
    %55 = vector.load %arg8[%c0_33, %c0_34] : memref<8x1280xf32, #tpu.memory_space<vmem>>, vector<8x256xf32>
    tpu.vector_store %arg8[%c0_33, %c0_34], %54 {strides = array<i32>} : memref<8x1280xf32, #tpu.memory_space<vmem>>, vector<8x256xf32>,
    %c0_35 = arith.constant 0 : index
    %c256_36 = arith.constant 256 : index
    %56 = vector.load %arg8[%c0_35, %c256_36] : memref<8x1280xf32, #tpu.memory_space<vmem>>, vector<8x512xf32>
    %cst_37 = arith.constant 0.000000e+00 : f32
    %57 = vector.broadcast %cst_37 : f32 to vector<8x512xf32>
    %58 = arith.cmpf ogt, %8, %57 : vector<8x512xf32>
    %59 = arith.extui %58 : vector<8x512xi1> to vector<8x512xi32>
    %60 = arith.sitofp %59 : vector<8x512xi32> to vector<8x512xf32>
    %61 = vector.shape_cast %60 : vector<8x512xf32> to vector<1x8x512xf32>
    %cst_38 = arith.constant dense<0.000000e+00> : vector<8x512xf32>
    %62 = vector.multi_reduction <add>, %61, %cst_38 [0] : vector<1x8x512xf32> to vector<8x512xf32>
    %63 = arith.addf %56, %62 : vector<8x512xf32>
    %c0_39 = arith.constant 0 : index
    %c256_40 = arith.constant 256 : index
    %64 = vector.load %arg8[%c0_39, %c256_40] : memref<8x1280xf32, #tpu.memory_space<vmem>>, vector<8x512xf32>
    tpu.vector_store %arg8[%c0_39, %c256_40], %63 {strides = array<i32>} : memref<8x1280xf32, #tpu.memory_space<vmem>>, vector<8x512xf32>,
    %c0_41 = arith.constant 0 : index
    %c768_42 = arith.constant 768 : index
    %65 = vector.load %arg8[%c0_41, %c768_42] : memref<8x1280xf32, #tpu.memory_space<vmem>>, vector<8x512xf32>
    %cst_43 = arith.constant 0.000000e+00 : f32
    %66 = vector.broadcast %cst_43 : f32 to vector<8x512xf32>
    %67 = arith.cmpf ogt, %11, %66 : vector<8x512xf32>
    %68 = arith.extui %67 : vector<8x512xi1> to vector<8x512xi32>
    %69 = arith.sitofp %68 : vector<8x512xi32> to vector<8x512xf32>
    %70 = vector.shape_cast %69 : vector<8x512xf32> to vector<1x8x512xf32>
    %cst_44 = arith.constant dense<0.000000e+00> : vector<8x512xf32>
    %71 = vector.multi_reduction <add>, %70, %cst_44 [0] : vector<1x8x512xf32> to vector<8x512xf32>
    %72 = arith.addf %65, %71 : vector<8x512xf32>
    %c0_45 = arith.constant 0 : index
    %c768_46 = arith.constant 768 : index
    %73 = vector.load %arg8[%c0_45, %c768_46] : memref<8x1280xf32, #tpu.memory_space<vmem>>, vector<8x512xf32>
    tpu.vector_store %arg8[%c0_45, %c768_46], %72 {strides = array<i32>} : memref<8x1280xf32, #tpu.memory_space<vmem>>, vector<8x512xf32>,
    %c0_i32_47 = arith.constant 0 : i32
    %74 = arith.cmpi eq, %arg1, %c0_i32_47 : i32
    %75 = arith.extui %74 : i1 to i32
    %c0_i32_48 = arith.constant 0 : i32
    %76 = arith.cmpi ne, %75, %c0_i32_48 : i32
    scf.if %76 {
      %c0_49 = arith.constant 0 : index
      %c0_50 = arith.constant 0 : index
      %77 = vector.load %arg6[%c0_49, %c0_50] : memref<8x1xf32, #tpu.memory_space<vmem>>, vector<8x1xf32>
      %cst_51 = arith.constant dense<0.000000e+00> : vector<1xf32>
      %78 = vector.multi_reduction <add>, %77, %cst_51 [0] : vector<8x1xf32> to vector<1xf32>
      %79 = vector.shape_cast %78 : vector<1xf32> to vector<1x1xf32>
      %c0_52 = arith.constant 0 : index
      %c0_53 = arith.constant 0 : index
      %80 = vector.load %arg7[%c0_52, %c0_53] : memref<8x1280xf32, #tpu.memory_space<vmem>>, vector<8x1280xf32>
      %cst_54 = arith.constant dense<0.000000e+00> : vector<1280xf32>
      %81 = vector.multi_reduction <add>, %80, %cst_54 [0] : vector<8x1280xf32> to vector<1280xf32>
      %82 = vector.shape_cast %81 : vector<1280xf32> to vector<1x1280xf32>
      %c0_55 = arith.constant 0 : index
      %c0_56 = arith.constant 0 : index
      %83 = vector.load %arg8[%c0_55, %c0_56] : memref<8x1280xf32, #tpu.memory_space<vmem>>, vector<8x1280xf32>
      %cst_57 = arith.constant dense<0.000000e+00> : vector<1280xf32>
      %84 = vector.multi_reduction <add>, %83, %cst_57 [0] : vector<8x1280xf32> to vector<1280xf32>
      %85 = vector.shape_cast %84 : vector<1280xf32> to vector<1x1280xf32>
      %cst_58 = arith.constant 9.99999968E-21 : f32
      %86 = vector.broadcast %cst_58 : f32 to vector<1x1xf32>
      %87 = arith.addf %79, %86 : vector<1x1xf32>
      %88 = math.rsqrt %87 : vector<1x1xf32>
      %89 = vector.broadcast %88 : vector<1x1xf32> to vector<1x1280xf32>
      %90 = arith.mulf %82, %89 : vector<1x1280xf32>
      %cst_59 = arith.constant 2.500000e-01 : f32
      %91 = vector.broadcast %cst_59 : f32 to vector<1x1280xf32>
      %92 = arith.mulf %85, %91 : vector<1x1280xf32>
      %cst_60 = arith.constant dense<0.000000e+00> : vector<1xf32>
      %93 = vector.multi_reduction <add>, %92, %cst_60 [1] : vector<1x1280xf32> to vector<1xf32>
      %94 = vector.shape_cast %93 : vector<1xf32> to vector<1x1xf32>
      %cst_61 = arith.constant 1.280000e-17 : f32
      %95 = vector.broadcast %cst_61 : f32 to vector<1x1xf32>
      %96 = arith.addf %95, %94 : vector<1x1xf32>
      %cst_62 = arith.constant 9.99999968E-21 : f32
      %97 = vector.broadcast %cst_62 : f32 to vector<1x1280xf32>
      %98 = arith.addf %97, %92 : vector<1x1280xf32>
      %99 = vector.broadcast %96 : vector<1x1xf32> to vector<1x1280xf32>
      %100 = arith.divf %99, %98 : vector<1x1280xf32>
      %cst_63 = arith.constant 9.99999968E-21 : f32
      %101 = vector.broadcast %cst_63 : f32 to vector<1x1280xf32>
      %102 = arith.addf %100, %101 : vector<1x1280xf32>
      %103 = math.log %102 : vector<1x1280xf32>
      %104 = arith.mulf %90, %103 : vector<1x1280xf32>
      %c0_64 = arith.constant 0 : index
      %c0_65 = arith.constant 0 : index
      %c0_66 = arith.constant 0 : index
      %105 = vector.load %arg5[%c0_64, %c0_65, %c0_66] : memref<1x1x1280xf32, #tpu.memory_space<vmem>>, vector<1x1x1280xf32>
      %106 = vector.shape_cast %105 : vector<1x1x1280xf32> to vector<1x1280xf32>
      %107 = vector.shape_cast %104 : vector<1x1280xf32> to vector<1x1x1280xf32>
      tpu.vector_store %arg5[%c0_64, %c0_65, %c0_66], %107 {strides = array<i32>} : memref<1x1x1280xf32, #tpu.memory_space<vmem>>, vector<1x1x1280xf32>,
    } else {
    }
    return
  }
  func.func @transform_0(%arg0: i32, %arg1: i32) -> (i32, i32, i32) {
    %c0_i32 = arith.constant 0 : i32
    %c0_i32_0 = arith.constant 0 : i32
    return %arg0, %arg1, %c0_i32 : i32, i32, i32
  }
  func.func @transform_1(%arg0: i32, %arg1: i32) -> (i32, i32, i32) {
    %c0_i32 = arith.constant 0 : i32
    %c0_i32_0 = arith.constant 0 : i32
    return %arg0, %arg1, %c0_i32 : i32, i32, i32
  }
  func.func @transform_2(%arg0: i32, %arg1: i32) -> (i32, i32, i32) {
    %c0_i32 = arith.constant 0 : i32
    %c0_i32_0 = arith.constant 0 : i32
    return %arg0, %arg1, %c0_i32 : i32, i32, i32
  }
  func.func @transform_3(%arg0: i32, %arg1: i32) -> (i32, i32, i32) {
    %c0_i32 = arith.constant 0 : i32
    %c0_i32_0 = arith.constant 0 : i32
    %c0_i32_1 = arith.constant 0 : i32
    return %arg0, %c0_i32, %c0_i32_0 : i32, i32, i32
  }
}

module attributes {stable_mosaic.version = 11 : i64} {
  func.func @saff_head_kernel(%arg0: memref<2x1280xf32, #tpu.memory_space<vmem>>, %arg1: memref<1x1280xf32, #tpu.memory_space<vmem>>, %arg2: memref<1x1280xf32, #tpu.memory_space<vmem>>, %arg3: memref<1280x128xbf16, #tpu.memory_space<vmem>>, %arg4: memref<1x128xf32, #tpu.memory_space<vmem>>, %arg5: memref<128x128xbf16, #tpu.memory_space<vmem>>, %arg6: memref<1x128xf32, #tpu.memory_space<vmem>>, %arg7: memref<2x128xf32, #tpu.memory_space<vmem>>) attributes {dimension_semantics = [], scalar_prefetch = 0 : i64, scratch_operands = 0 : i64, tpu.core_type = #tpu.core_type<tc>} {
    %c0 = arith.constant 0 : index
    %c0_0 = arith.constant 0 : index
    %0 = vector.load %arg0[%c0, %c0_0] : memref<2x1280xf32, #tpu.memory_space<vmem>>, vector<2x1280xf32>
    %cst = arith.constant dense<0.000000e+00> : vector<1280xf32>
    %1 = vector.multi_reduction <add>, %0, %cst [0] : vector<2x1280xf32> to vector<1280xf32>
    %2 = vector.shape_cast %1 : vector<1280xf32> to vector<1x1280xf32>
    %cst_1 = arith.constant 2.000000e+00 : f32
    %3 = vector.broadcast %cst_1 : f32 to vector<1x1280xf32>
    %4 = arith.divf %2, %3 : vector<1x1280xf32>
    %5 = vector.broadcast %4 : vector<1x1280xf32> to vector<2x1280xf32>
    %6 = arith.subf %0, %5 : vector<2x1280xf32>
    %7 = arith.mulf %6, %6 : vector<2x1280xf32>
    %cst_2 = arith.constant dense<0.000000e+00> : vector<1280xf32>
    %8 = vector.multi_reduction <add>, %7, %cst_2 [0] : vector<2x1280xf32> to vector<1280xf32>
    %9 = vector.shape_cast %8 : vector<1280xf32> to vector<1x1280xf32>
    %cst_3 = arith.constant 2.000000e+00 : f32
    %10 = vector.broadcast %cst_3 : f32 to vector<1x1280xf32>
    %11 = arith.divf %9, %10 : vector<1x1280xf32>
    %12 = vector.broadcast %4 : vector<1x1280xf32> to vector<2x1280xf32>
    %13 = arith.subf %0, %12 : vector<2x1280xf32>
    %cst_4 = arith.constant 9.99999974E-6 : f32
    %14 = vector.broadcast %cst_4 : f32 to vector<1x1280xf32>
    %15 = arith.addf %11, %14 : vector<1x1280xf32>
    %16 = math.rsqrt %15 : vector<1x1280xf32>
    %17 = vector.broadcast %16 : vector<1x1280xf32> to vector<2x1280xf32>
    %18 = arith.mulf %13, %17 : vector<2x1280xf32>
    %c0_5 = arith.constant 0 : index
    %c0_6 = arith.constant 0 : index
    %19 = vector.load %arg1[%c0_5, %c0_6] : memref<1x1280xf32, #tpu.memory_space<vmem>>, vector<1x1280xf32>
    %20 = vector.broadcast %19 : vector<1x1280xf32> to vector<2x1280xf32>
    %21 = arith.mulf %18, %20 : vector<2x1280xf32>
    %c0_7 = arith.constant 0 : index
    %c0_8 = arith.constant 0 : index
    %22 = vector.load %arg2[%c0_7, %c0_8] : memref<1x1280xf32, #tpu.memory_space<vmem>>, vector<1x1280xf32>
    %23 = vector.broadcast %22 : vector<1x1280xf32> to vector<2x1280xf32>
    %24 = arith.addf %21, %23 : vector<2x1280xf32>
    %25 = arith.truncf %24 : vector<2x1280xf32> to vector<2x1280xbf16>
    %c0_9 = arith.constant 0 : index
    %c0_10 = arith.constant 0 : index
    %26 = vector.load %arg3[%c0_9, %c0_10] : memref<1280x128xbf16, #tpu.memory_space<vmem>>, vector<1280x128xbf16>
    %cst_11 = arith.constant dense<0.000000e+00> : vector<2x128xf32>
    %27 = tpu.matmul %25, %26, %cst_11 {dimension_numbers = #tpu.dot_dimension_numbers<[1], [0], [0], [1], [0, 0, 1, 1], [], []>} : vector<2x1280xbf16>, vector<1280x128xbf16>, vector<2x128xf32> -> vector<2x128xf32>
    %c0_12 = arith.constant 0 : index
    %c0_13 = arith.constant 0 : index
    %28 = vector.load %arg4[%c0_12, %c0_13] : memref<1x128xf32, #tpu.memory_space<vmem>>, vector<1x128xf32>
    %29 = vector.broadcast %28 : vector<1x128xf32> to vector<2x128xf32>
    %30 = arith.addf %27, %29 : vector<2x128xf32>
    %cst_14 = arith.constant 0.000000e+00 : f32
    %31 = vector.broadcast %cst_14 : f32 to vector<2x128xf32>
    %32 = arith.maximumf %30, %31 : vector<2x128xf32>
    %33 = arith.truncf %32 : vector<2x128xf32> to vector<2x128xbf16>
    %c0_15 = arith.constant 0 : index
    %c0_16 = arith.constant 0 : index
    %34 = vector.load %arg5[%c0_15, %c0_16] : memref<128x128xbf16, #tpu.memory_space<vmem>>, vector<128x128xbf16>
    %cst_17 = arith.constant dense<0.000000e+00> : vector<2x128xf32>
    %35 = tpu.matmul %33, %34, %cst_17 {dimension_numbers = #tpu.dot_dimension_numbers<[1], [0], [0], [1], [0, 0, 1, 1], [], []>} : vector<2x128xbf16>, vector<128x128xbf16>, vector<2x128xf32> -> vector<2x128xf32>
    %c0_18 = arith.constant 0 : index
    %c0_19 = arith.constant 0 : index
    %36 = vector.load %arg6[%c0_18, %c0_19] : memref<1x128xf32, #tpu.memory_space<vmem>>, vector<1x128xf32>
    %37 = vector.broadcast %36 : vector<1x128xf32> to vector<2x128xf32>
    %38 = arith.addf %35, %37 : vector<2x128xf32>
    %c0_20 = arith.constant 0 : index
    %c0_21 = arith.constant 0 : index
    %39 = vector.load %arg7[%c0_20, %c0_21] : memref<2x128xf32, #tpu.memory_space<vmem>>, vector<2x128xf32>
    tpu.vector_store %arg7[%c0_20, %c0_21], %38 {strides = array<i32>} : memref<2x128xf32, #tpu.memory_space<vmem>>, vector<2x128xf32>,
    return
  }
}

</mosaic_0001>

<bundles_post_ra>
// kernel: saff_forward.2
= control target key start
LH: loop header
LB: loop body
LE: loop exit
PB: predicated region body
PF: predicated region fallthrough
CT: control target
= control target key end

     0   :  { %s1051_s12 = smov 0   ;;  %s1053_s13 = smov 0   ;;  %s1191_s0 = inlined_call_operand.vmem [shape: bf16[2,8,256], index: 0, kind: input, shape index: {}]   ;;  %s1192_s1 = inlined_call_operand.vmem [shape: bf16[2,8,512], index: 1, kind: input, shape index: {}]   ;;  %s1193_s2 = inlined_call_operand.vmem [shape: bf16[2,8,512], index: 2, kind: input, shape index: {}]   ;;  %s1194_s3 = inlined_call_operand.vmem [shape: f32[2,1,1280], index: 3, kind: output, shape index: {}]  }
   0x1   :  { %s1055_s14 = smov 0  }
   0x2 LB: > { %s25_s15 = sadd.s32 1, %s1022_s13  ;;  %p909_p0 = scmp.ge.s32.totalorder %s1026_s14, 1  ;;  %s1026_s14 = sphi %s1055_s14, %s13_s14   ;;  %s1022_s13 = sphi %s1053_s13, %s1196_s13   ;;  %s1018_s12 = sphi %s1051_s12, %s1195_s12  }
   0x3   : > { %p27_p1 = scmp.ge.s32.totalorder %s25_s15, 2  ;;  %p187_p2 = scmp.lt.s32.totalorder %s1026_s14, 3 }
   0x5   : > { %s1198_s15 = smov (%p27_p1, %s25_s15), 0  ;;  %p188_p3 = pnand %p909_p0, %p187_p2 }
   0x6   : > { %p232_p4 = scmp.lt.s32.totalorder (!%p188_p3), %s1018_s12, 1  ;;  %v1028_v14 = vmov (!%p188_p3), 0.0   ;;  %vm267_vm10 = vcmask (!%p188_p3), 7168  }
   0x7   : > { %191 = sbr.rel (%p188_p3) target bundleno = 369 (0x171), region = 32  ;;  %268 = vst.msk [vmem:[#allocation2] sm:$0xff] (!%p188_p3), %vm267_vm10, %v1028_v14 }
   0xe   : > { %s1200_s12 = smov (!%p232_p4, %s1018_s12), 1 }
   0xf   : > { %s928_s16 = sshll.u32 %s1200_s12, 3  ;;  %s929_s20 = sshll.u32 %s1200_s12, 4 }
  0x10   : > { %s240_s19 = scalar_lea.vmem %s1191_s0, %s928_s16  ;;  %s249_s23 = scalar_lea.vmem %s1192_s1, %s929_s20 }
  0x11   : > { %v289_v0 = vld [vmem:[%s240_s19] sm:$0xff]  ;;  %v293_v4 = vld [vmem:[%s249_s23 + $0x8] sm:$0xff]  ;;  %s258_s26 = scalar_lea.vmem %s1193_s2, %s929_s20  ;;  %s931_s27 = smul.u32 10, %s1200_s12 }
  0x12   : > { %v1079_v1 = vunpack.c.l.bf16 %v289_v0  ;;  %v1081_v2 = vunpack.c.h.bf16 %v289_v0  ;;  %v292_v3 = vld [vmem:[%s249_s23] sm:$0xff]  ;;  %v1087_v7 = vunpack.c.l.bf16 %v293_v4  ;;  %v1094_v9 = vunpack.c.h.bf16 %v293_v4  ;;  %v299_v13 = vld [vmem:[%s258_s26 + $0x8] sm:$0xff] }
  0x13   : > { %v1083_v5 = vunpack.c.l.bf16 %v292_v3  ;;  %v1085_v6 = vunpack.c.h.bf16 %v292_v3  ;;  %v298_v11 = vld [vmem:[%s258_s26] sm:$0xff]  ;;  %v1109_v20 = vunpack.c.l.bf16 %v299_v13  ;;  %v1111_v23 = vunpack.c.h.bf16 %v299_v13  ;;  %s262_s30 = scalar_lea.vmem %s1194_s3, %s931_s27 }
  0x14   : > { %v304_v8 = vadd.f32 %v1081_v2, %v1079_v1  ;;  %vm383_vm0 = vcmp.gt.f32.partialorder %v1079_v1, 0.0  ;;  %vm384_vm1 = vcmp.gt.f32.partialorder %v1081_v2, 0.0  ;;  %v1104_v18 = vunpack.c.l.bf16 %v298_v11 }
  0x15   : > { %v307_v10 = vadd.f32 %v1085_v6, %v1083_v5  ;;  %v916_v15 = vsel %vm383_vm0, 1.0, %v1028_v14  ;;  %v917_v16 = vsel %vm384_vm1, 1.0, %v1028_v14  ;;  %v1106_v19 = vunpack.c.h.bf16 %v298_v11 }
  0x16   : > { %305 = vadd.xlane.f32.xlu0 %v304_v8  ;;  %vm399_vm2 = vcmp.gt.f32.partialorder %v1083_v5, 0.0  ;;  %v542_v21 = vrot.slane %v916_v15, 4  ;;  %v548_v22 = vrot.slane %v917_v16, 4  ;;  %vm400_vm3 = vcmp.gt.f32.partialorder %v1085_v6, 0.0 }
  0x17   : > { %v308_v12 = vadd.f32 %v307_v10, %v1087_v7  ;;  %v313_v24 = vadd.f32 %v1106_v19, %v1104_v18  ;;  %v918_v25 = vsel %vm399_vm2, 1.0, %v1028_v14  ;;  %vm401_vm4 = vcmp.gt.f32.partialorder %v1087_v7, 0.0 }
  0x18   : > { %v543_v27 = vadd.f32 %v916_v15, %v542_v21  ;;  %v549_v28 = vadd.f32 %v917_v16, %v548_v22  ;;  %v554_v29 = vrot.slane %v918_v25, 4  ;;  %v919_v31 = vsel %vm400_vm3, 1.0, %v1028_v14 }
  0x19   : > { %v309_v17 = vadd.f32 %v308_v12, %v1094_v9  ;;  %v314_v26 = vadd.f32 %v313_v24, %v1109_v20  ;;  %vm402_vm5 = vcmp.gt.f32.partialorder %v1094_v9, 0.0  ;;  %v920_v34 = vsel %vm401_vm4, 1.0, %v1028_v14 }
  0x1a   : > { %v544_v32 = vrot.slane %v543_v27, 2  ;;  %v550_v33 = vrot.slane %v549_v28, 2  ;;  %v555_v35 = vadd.f32 %v918_v25, %v554_v29  ;;  %v560_v36 = vrot.slane %v919_v31, 4 }
  0x1b   : > { %310 = vadd.xlane.f32.xlu0 %v309_v17  ;;  %v315_v30 = vadd.f32 %v314_v26, %v1111_v23  ;;  %v921_v37 = vsel %vm402_vm5, 1.0, %v1028_v14  ;;  %v566_v38 = vrot.slane %v920_v34, 4  ;;  %vm427_vm6 = vcmp.gt.f32.partialorder %v1104_v18, 0.0 }
  0x1c   : > { %v545_v39 = vadd.f32 %v544_v32, %v543_v27  ;;  %v551_v40 = vadd.f32 %v550_v33, %v549_v28  ;;  %v556_v41 = vrot.slane %v555_v35, 2  ;;  %v561_v42 = vadd.f32 %v919_v31, %v560_v36 }
  0x1d   : > { %316 = vadd.xlane.f32.xlu1 %v315_v30  ;;  %v572_v43 = vrot.slane %v921_v37, 4  ;;  %v567_v44 = vadd.f32 %v920_v34, %v566_v38  ;;  %v922_v47 = vsel %vm427_vm6, 1.0, %v1028_v14  ;;  %vm428_vm7 = vcmp.gt.f32.partialorder %v1106_v19, 0.0 }
  0x1e   : > { %v546_v45 = vrot.slane %v545_v39, 1  ;;  %v552_v46 = vrot.slane %v551_v40, 1  ;;  %v557_v48 = vadd.f32 %v556_v41, %v555_v35  ;;  %v562_v49 = vrot.slane %v561_v42, 2 }
  0x1f   : > { %v573_v50 = vadd.f32 %v921_v37, %v572_v43  ;;  %v568_v51 = vrot.slane %v567_v44, 2  ;;  %v578_v52 = vrot.slane %v922_v47, 4  ;;  %vm429_vm8 = vcmp.gt.f32.partialorder %v1109_v20, 0.0 }
  0x20   : > { %v547_v53 = vadd.f32 %v546_v45, %v545_v39  ;;  %v553_v54 = vadd.f32 %v552_v46, %v551_v40  ;;  %v558_v56 = vrot.slane %v557_v48, 1  ;;  %v563_v57 = vadd.f32 %v562_v49, %v561_v42 }
  0x21   : > { %v574_v55 = vrot.slane %v573_v50, 2  ;;  %vm430_vm9 = vcmp.gt.f32.partialorder %v1111_v23, 0.0  ;;  %v923_v58 = vsel %vm428_vm7, 1.0, %v1028_v14  ;;  %v569_v61 = vadd.f32 %v568_v51, %v567_v44 }
  0x22   : > { %v559_v59 = vadd.f32 %v558_v56, %v557_v48  ;;  %v564_v60 = vrot.slane %v563_v57, 1  ;;  %v579_v62 = vadd.f32 %v922_v47, %v578_v52  ;;  %v1130_v63 = vmul.f32 0.25, %v547_v53 }
  0x23   : > { %v1132_v0 = vmul.f32 0.25, %v553_v54  ;;  %v924_v3 = vsel %vm429_vm8, 1.0, %v1028_v14  ;;  %v584_v4 = vrot.slane %v923_v58, 4  ;;  %v570_v10 = vrot.slane %v569_v61, 1 }
  0x24   : > { %v565_v8 = vadd.f32 %v564_v60, %v563_v57  ;;  %v575_v11 = vadd.f32 %v574_v55, %v573_v50  ;;  %v580_v12 = vrot.slane %v579_v62, 2  ;;  %v925_v13 = vsel %vm430_vm9, 1.0, %v1028_v14 }
  0x25   : > { %v585_v15 = vadd.f32 %v923_v58, %v584_v4  ;;  %v590_v16 = vrot.slane %v924_v3, 4  ;;  %v1136_v17 = vmul.f32 0.25, %v559_v59  ;;  %v571_v21 = vadd.f32 %v570_v10, %v569_v61 }
  0x26   : > { %v576_v22 = vrot.slane %v575_v11, 1  ;;  %v581_v24 = vadd.f32 %v580_v12, %v579_v62  ;;  %v596_v25 = vrot.slane %v925_v13, 4  ;;  %v1138_v28 = vmul.f32 0.25, %v565_v8 }
  0x27   : > { %v586_v26 = vrot.slane %v585_v15, 2  ;;  %v591_v27 = vadd.f32 %v924_v3, %v590_v16  ;;  %v629_v29 = vadd.f32 %v1132_v0, %v1130_v63  ;;  %v1142_v33 = vmul.f32 0.25, %v571_v21 }
  0x28   : > { %v577_v30 = vadd.f32 %v576_v22, %v575_v11  ;;  %v582_v31 = vrot.slane %v581_v24, 1  ;;  %v597_v32 = vadd.f32 %v925_v13, %v596_v25  ;;  %v1029_v56 = vmov 0   ;;  %v326_v11 = vld [vmem:[#allocation2] sm:$0xff] }
  0x29   : > { %v587_v34 = vadd.f32 %v586_v26, %v585_v15  ;;  %v592_v35 = vrot.slane %v591_v27, 2  ;;  %v630_v36 = vadd.f32 %v629_v29, %v1136_v17  ;;  %959 = vset.pattern.permute.xlu0 %v1029_v56 }
  0x2a   : > { %v583_v37 = vadd.f32 %v582_v31, %v581_v24  ;;  %v598_v38 = vrot.slane %v597_v32, 2  ;;  %v624_v41 = vmul.f32 0.25, %v577_v30 }
  0x2b   : > { %v588_v39 = vrot.slane %v587_v34, 1  ;;  %v593_v40 = vadd.f32 %v592_v35, %v591_v27  ;;  %v631_v42 = vadd.f32 %v630_v36, %v1138_v28  ;;  %v643_v35 = vadd.f32 1e-20, %v1136_v17 }
  0x2c   : > { %v599_v43 = vadd.f32 %v598_v38, %v597_v32  ;;  %v625_v46 = vmul.f32 0.25, %v583_v37  ;;  %v641_v32 = vadd.f32 1e-20, %v1130_v63  ;;  %v644_v36 = vadd.f32 1e-20, %v1138_v28 }
  0x2d   : > { %v589_v44 = vadd.f32 %v588_v39, %v587_v34  ;;  %v594_v45 = vrot.slane %v593_v40, 1  ;;  %v632_v47 = vadd.f32 %v631_v42, %v1142_v33  ;;  %v642_v34 = vadd.f32 1e-20, %v1132_v0 }
  0x2e   : > { %v600_v48 = vrot.slane %v599_v43, 1  ;;  %v645_v37 = vadd.f32 1e-20, %v1142_v33  ;;  %v646_v38 = vadd.f32 1e-20, %v624_v41 }
  0x2f   : > { %v595_v49 = vadd.f32 %v594_v45, %v593_v40  ;;  %v626_v50 = vmul.f32 0.25, %v589_v44  ;;  %v633_v51 = vadd.f32 %v632_v47, %v624_v41  ;;  %v647_v39 = vadd.f32 1e-20, %v625_v46 }
  0x30   : > { %v601_v52 = vadd.f32 %v600_v48, %v599_v43 }
  0x31   : > { %v627_v53 = vmul.f32 0.25, %v595_v49  ;;  %v634_v54 = vadd.f32 %v633_v51, %v625_v46  ;;  %v648_v40 = vadd.f32 1e-20, %v626_v50 }
  0x32   : > { %v628_v55 = vmul.f32 0.25, %v601_v52 }
  0x33   : > { %v635_v14 = vadd.f32 %v634_v54, %v626_v50  ;;  %v649_v42 = vadd.f32 1e-20, %v627_v53 }
  0x34   : > { %v650_v43 = vadd.f32 1e-20, %v628_v55 }
  0x35   : > { %v636_v57 = vadd.f32 %v635_v14, %v627_v53 }
  0x37   : > { %v637_v58 = vadd.f32 %v636_v57, %v628_v55 }
  0x39   : > { %638 = vadd.xlane.f32.xlu1 %v637_v58 }
  0xa3   : > { %v306_v59 = vpop.xlane.xlu0 %305 }
  0xa8   : > { %v311_v60 = vpop.xlane.xlu0 %310 }
  0xa9   : > { %v312_v61 = vadd.f32 %v311_v60, %v306_v59 }
  0xaa   : > { %v317_v62 = vpop.xlane.xlu1 %316 }
  0xab   : > { %v318_v3 = vadd.f32 %v317_v62, %v312_v61 }
  0xad   : > { %960 = vrsqrt.f32 %v318_v3  ;;  %vm321_vm11 = vcmp.eq.f32.partialorder %v318_v3, inf  ;;  %v324_v10 = vand.u32 2147483648, %v318_v3  ;;  %vm323_vm12 = vcmp.eq.f32.partialorder %v318_v3, 0.0 }
  0xb7   : > { %v961_v4 = vpop.eup %960 }
  0xb8   : > { %v320_v8 = vmul.f32 %v961_v4, %v318_v3 }
  0xba   : > { %v322_v12 = vsel %vm321_vm11, %v318_v3, %v320_v8 }
  0xbb   : > { %v325_v13 = vsel %vm323_vm12, %v324_v10, %v322_v12 }
  0xbc   : > { %v328_v15 = vadd.f32 %v326_v11, %v325_v13  ;;  %v333_v28 = vmul.f32 %v325_v13, %v1079_v1  ;;  %v334_v41 = vmul.f32 %v325_v13, %v1081_v2  ;;  %v345_v45 = vmul.f32 %v325_v13, %v1083_v5 }
  0xbd   : > { %v346_v47 = vmul.f32 %v325_v13, %v1085_v6  ;;  %v347_v48 = vmul.f32 %v325_v13, %v1087_v7  ;;  %v348_v51 = vmul.f32 %v325_v13, %v1094_v9  ;;  %v365_v1 = vmul.f32 %v325_v13, %v1104_v18 }
  0xbe   : > { %330 = vst.msk [vmem:[#allocation2] sm:$0xff] %vm267_vm10, %v328_v15  ;;  %v472_v52 = vrot.slane %v333_v28, 4  ;;  %v366_v55 = vmul.f32 %v325_v13, %v1106_v19  ;;  %v367_v2 = vmul.f32 %v325_v13, %v1109_v20  ;;  %v368_v56 = vmul.f32 %v325_v13, %v1111_v23 }
  0xbf   : > { %v478_v6 = vrot.slane %v334_v41, 4  ;;  %v484_v57 = vrot.slane %v345_v45, 4  ;;  %v490_v59 = vrot.slane %v346_v47, 4  ;;  %v496_v60 = vrot.slane %v347_v48, 4 }
  0xc0   : > { %v473_v3 = vadd.f32 %v472_v52, %v333_v28  ;;  %v502_v4 = vrot.slane %v348_v51, 4  ;;  %v508_v10 = vrot.slane %v365_v1, 4  ;;  %v514_v20 = vrot.slane %v366_v55, 4 }
  0xc1   : > { %v479_v15 = vadd.f32 %v478_v6, %v334_v41  ;;  %v485_v23 = vadd.f32 %v484_v57, %v345_v45  ;;  %v728_v41 = vlaneseq }
  0xc3   : > { %vm790_vm13 = vcmp.lt.s32.totalorder %v728_v41, 256 }
  0xc5   : > { %v454_v16 = vld [vmem:[#allocation2] sm:$0xff] }
  0xc6   : > { %v455_v21 = vsel %vm267_vm10, %v454_v16, 0.0  ;;  %v639_v63 = vpop.xlane.xlu1 %638 }
  0xc7   : > { %v456_v22 = vrot.slane %v455_v21, 4  ;;  %v640_v0 = vadd.f32 1.28e-17, %v639_v63 }
  0xc9   : > { %v457_v24 = vadd.f32 %v456_v22, %v455_v21  ;;  %v491_v21 = vadd.f32 %v490_v59, %v346_v47  ;;  %v1030_v47 = vmov 1966171168  }
  0xcb   : > { %v458_v25 = vrot.slane %v457_v24, 2  ;;  %v492_v63 = vrot.slane %v491_v21, 2 }
  0xcd   : > { %v459_v26 = vadd.f32 %v458_v25, %v457_v24  ;;  %v520_v25 = vrot.slane %v367_v2, 4  ;;  %v493_v52 = vadd.f32 %v492_v63, %v491_v21 }
  0xcf   : > { %v460_v27 = vrot.slane %v459_v26, 1 }
  0xd1   : > { %v461_v29 = vadd.f32 %v460_v27, %v459_v26 }
  0xd3   : > { %v602_v30 = vadd.f32 1e-20, %v461_v29  ;;  %v497_v29 = vadd.f32 %v496_v60, %v347_v48  ;;  %v726_v48 = vunpack.c.l.s4 %v1030_v47 }
  0xd5   : > { %962 = vrsqrt.f32 %v602_v30  ;;  %v526_v30 = vrot.slane %v368_v56, 4 }
  0xd6   : > { %964 = vrcp.f32 %v641_v32  ;;  %v503_v32 = vadd.f32 %v502_v4, %v348_v51 }
  0xd7   : > { %966 = vrcp.f32 %v642_v34  ;;  %v509_v34 = vadd.f32 %v508_v10, %v365_v1 }
  0xd8   : > { %968 = vrcp.f32 %v643_v35  ;;  %v504_v28 = vrot.slane %v503_v32, 2 }
  0xd9   : > { %970 = vrcp.f32 %v644_v36  ;;  %v474_v36 = vrot.slane %v473_v3, 2 }
  0xda   : > { %972 = vrcp.f32 %v645_v37  ;;  %v515_v37 = vadd.f32 %v514_v20, %v366_v55  ;;  %v505_v55 = vadd.f32 %v504_v28, %v503_v32 }
  0xdb   : > { %974 = vrcp.f32 %v646_v38  ;;  %v475_v45 = vadd.f32 %v474_v36, %v473_v3 }
  0xdc   : > { %976 = vrcp.f32 %v647_v39  ;;  %v480_v39 = vrot.slane %v479_v15, 2 }
  0xdd   : > { %978 = vrcp.f32 %v648_v40  ;;  %v521_v40 = vadd.f32 %v520_v25, %v367_v2  ;;  %v476_v6 = vrot.slane %v475_v45, 1 }
  0xde   : > { %980 = vrcp.f32 %v649_v42 }
  0xdf   : > { %v963_v31 = vpop.eup %962  ;;  %982 = vrcp.f32 %v650_v43  ;;  %v486_v43 = vrot.slane %v485_v23, 2 }
  0xe0   : > { %606 = vperm.xlu0 %959, %v963_v31   ;;  %v965_v17 = vpop.eup %964 }
  0xe1   : > { %v967_v33 = vpop.eup %966  ;;  %v652_v49 = vmul.f32 %v965_v17, %v640_v0  ;;  %v498_v17 = vrot.slane %v497_v29, 2  ;;  %v487_v51 = vadd.f32 %v486_v43, %v485_v23 }
  0xe2   : > { %v969_v44 = vpop.eup %968  ;;  %v654_v53 = vmul.f32 %v967_v33, %v640_v0  ;;  %v510_v33 = vrot.slane %v509_v34, 2 }
  0xe3   : > { %v971_v46 = vpop.eup %970  ;;  %v656_v14 = vmul.f32 %v969_v44, %v640_v0  ;;  %v671_v61 = vadd.f32 1e-20, %v652_v49  ;;  %v516_v44 = vrot.slane %v515_v37, 2  ;;  %v499_v1 = vadd.f32 %v498_v17, %v497_v29 }
  0xe4   : > { %v973_v50 = vpop.eup %972  ;;  %v658_v7 = vmul.f32 %v971_v46, %v640_v0  ;;  %v672_v8 = vadd.f32 1e-20, %v654_v53  ;;  %v522_v46 = vrot.slane %v521_v40, 2  ;;  %v511_v2 = vadd.f32 %v510_v33, %v509_v34 }
  0xe5   : > { %v975_v54 = vpop.eup %974  ;;  %v660_v9 = vmul.f32 %v973_v50, %v640_v0  ;;  %v673_v12 = vadd.f32 1e-20, %v656_v14  ;;  %984 = vlog2.f32 %v671_v61  ;;  %v481_v50 = vadd.f32 %v480_v39, %v479_v15 }
  0xe6   : > { %v977_v5 = vpop.eup %976  ;;  %v662_v18 = vmul.f32 %v975_v54, %v640_v0  ;;  %v674_v16 = vadd.f32 1e-20, %v658_v7  ;;  %986 = vlog2.f32 %v672_v8  ;;  %v523_v57 = vadd.f32 %v522_v46, %v521_v40 }
  0xe7   : > { %v979_v58 = vpop.eup %978  ;;  %v664_v11 = vmul.f32 %v977_v5, %v640_v0  ;;  %v675_v24 = vadd.f32 1e-20, %v660_v9  ;;  %988 = vlog2.f32 %v673_v12  ;;  %v517_v5 = vadd.f32 %v516_v44, %v515_v37 }
  0xe8   : > { %v981_v62 = vpop.eup %980  ;;  %v666_v13 = vmul.f32 %v979_v58, %v640_v0  ;;  %v676_v27 = vadd.f32 1e-20, %v662_v18  ;;  %990 = vlog2.f32 %v674_v16  ;;  %v727_v7 = vunpack.c.0.s8 %v726_v48 }
  0xe9   : > { %v983_v19 = vpop.eup %982  ;;  %v668_v22 = vmul.f32 %v981_v62, %v640_v0  ;;  %v677_v31 = vadd.f32 1e-20, %v664_v11  ;;  %992 = vlog2.f32 %v675_v24  ;;  %v729_v58 = vshrl.u32 %v728_v41, 7 }
  0xea   : > { %v670_v26 = vmul.f32 %v983_v19, %v640_v0  ;;  %v678_v35 = vadd.f32 1e-20, %v666_v13  ;;  %994 = vlog2.f32 %v676_v27  ;;  %v527_v0 = vadd.f32 %v526_v30, %v368_v56 }
  0xeb   : > { %v679_v38 = vadd.f32 1e-20, %v668_v22  ;;  %996 = vlog2.f32 %v677_v31  ;;  %v482_v60 = vrot.slane %v481_v50, 1  ;;  %v488_v9 = vrot.slane %v487_v51, 1 }
  0xec   : > { %v680_v42 = vadd.f32 1e-20, %v670_v26  ;;  %998 = vlog2.f32 %v678_v35  ;;  %v528_v53 = vrot.slane %v527_v0, 2  ;;  %v494_v61 = vrot.slane %v493_v52, 1 }
  0xed   : > { %1000 = vlog2.f32 %v679_v38  ;;  %v500_v4 = vrot.slane %v499_v1, 1  ;;  %v506_v18 = vrot.slane %v505_v55, 1  ;;  %v512_v8 = vrot.slane %v511_v2, 1 }
  0xee   : > { %1002 = vlog2.f32 %v680_v42  ;;  %v529_v62 = vadd.f32 %v528_v53, %v527_v0  ;;  %v518_v10 = vrot.slane %v517_v5, 1  ;;  %v477_v11 = vadd.f32 %v476_v6, %v475_v45 }
  0xef   : > { %v985_v49 = vpop.eup %984  ;;  %v524_v12 = vrot.slane %v523_v57, 1  ;;  %v1167_v15 = vsub.s32 %v727_v7, %v729_v58  ;;  %v483_v13 = vadd.f32 %v482_v60, %v481_v50  ;;  %v489_v16 = vadd.f32 %v488_v9, %v487_v51 }
  0xf0   : > { %v987_v54 = vpop.eup %986  ;;  %v495_v21 = vadd.f32 %v494_v61, %v493_v52  ;;  %v530_v22 = vrot.slane %v529_v62, 1  ;;  %v501_v25 = vadd.f32 %v500_v4, %v499_v1  ;;  %v507_v26 = vadd.f32 %v506_v18, %v505_v55 }
  0xf1   : > { %v989_v14 = vpop.eup %988  ;;  %v513_v27 = vadd.f32 %v512_v8, %v511_v2  ;;  %v682_v29 = vmul.f32 0.6931472, %v985_v49  ;;  %v519_v30 = vadd.f32 %v518_v10, %v517_v5  ;;  %v684_v31 = vmul.f32 0.6931472, %v987_v54 }
  0xf2   : > { %v991_v56 = vpop.eup %990  ;;  %v686_v32 = vmul.f32 0.6931472, %v989_v14  ;;  %v525_v35 = vadd.f32 %v524_v12, %v523_v57  ;;  %v531_v39 = vadd.f32 %v530_v22, %v529_v62 }
  0xf3   : > { %v993_v59 = vpop.eup %992  ;;  %v688_v34 = vmul.f32 0.6931472, %v991_v56 }
  0xf4   : > { %v995_v3 = vpop.eup %994  ;;  %v690_v36 = vmul.f32 0.6931472, %v993_v59 }
  0xf5   : > { %v997_v19 = vpop.eup %996  ;;  %v692_v37 = vmul.f32 0.6931472, %v995_v3 }
  0xf6   : > { %v999_v20 = vpop.eup %998  ;;  %v694_v38 = vmul.f32 0.6931472, %v997_v19 }
  0xf7   : > { %v1001_v23 = vpop.eup %1000  ;;  %v696_v40 = vmul.f32 0.6931472, %v999_v20 }
  0xf8   : > { %v1003_v24 = vpop.eup %1002  ;;  %v698_v42 = vmul.f32 0.6931472, %v1001_v23 }
  0xf9   : > { %v700_v43 = vmul.f32 0.6931472, %v1003_v24 }
 0x15f   : > { %v607_v63 = vpop.permute.xlu0 %606 }
 0x160   : > { %v609_v0 = vmul.f32 %v607_v63, %v477_v11  ;;  %v610_v17 = vmul.f32 %v607_v63, %v483_v13  ;;  %v611_v28 = vmul.f32 %v607_v63, %v489_v16  ;;  %v612_v33 = vmul.f32 %v607_v63, %v495_v21 }
 0x161   : > { %v613_v44 = vmul.f32 %v607_v63, %v501_v25  ;;  %v614_v45 = vmul.f32 %v607_v63, %v507_v26  ;;  %v615_v46 = vmul.f32 %v607_v63, %v513_v27  ;;  %v616_v47 = vmul.f32 %v607_v63, %v519_v30 }
 0x162   : > { %v617_v48 = vmul.f32 %v607_v63, %v525_v35  ;;  %v618_v49 = vmul.f32 %v607_v63, %v531_v39  ;;  %v701_v50 = vmul.f32 %v682_v29, %v609_v0  ;;  %v702_v51 = vmul.f32 %v684_v31, %v610_v17 }
 0x163   : > { %v703_v52 = vmul.f32 %v686_v32, %v611_v28  ;;  %v704_v53 = vmul.f32 %v688_v34, %v612_v33  ;;  %v705_v54 = vmul.f32 %v690_v36, %v613_v44  ;;  %v706_v1 = vmul.f32 %v692_v37, %v614_v45 }
 0x164   : > { %v707_v55 = vmul.f32 %v694_v38, %v615_v46  ;;  %v708_v2 = vmul.f32 %v696_v40, %v616_v47  ;;  %v709_v14 = vmul.f32 %v698_v42, %v617_v48  ;;  %v710_v5 = vmul.f32 %v700_v43, %v618_v49 }
 0x165   : > { %v721_v56 = vcombine.low %v701_v50, %v702_v51  ;;  %v722_v6 = vcombine.low %v703_v52, %v704_v53  ;;  %v723_v57 = vcombine.low %v705_v54, %v706_v1 }
 0x166   : > { %v724_v7 = vcombine.low %v707_v55, %v708_v2  ;;  %v770_v58 = vcombine.low %v709_v14, %v710_v5 }
 0x167   : > { %v731_v59 = vrot.slane %v721_v56, %v1167_v15  ;;  %v738_v60 = vrot.slane %v722_v6, %v1167_v15  ;;  %v745_v9 = vrot.slane %v723_v57, %v1167_v15 }
 0x168   : > { %v752_v61 = vrot.slane %v724_v7, %v1167_v15  ;;  %v777_v62 = vrot.slane %v770_v58, %v1167_v15 }
 0x169   : > { %v753_v3 = vcombine.low %v731_v59, %v738_v60 }
 0x16a   : > { %v754_v4 = vcombine.low %v745_v9, %v752_v61  ;;  %v784_v18 = vrot.slane %v777_v62, %v1167_v15 }
 0x16b   : > { %v761_v8 = vrot.slane %v753_v3, %v1167_v15 }
 0x16c   : > { %v768_v19 = vrot.slane %v754_v4, %v1167_v15  ;;  %792 = vst.msk [vmem:[%s262_s30 + $0x8] sm:$0x3] %vm790_vm13, %v784_v18 }
 0x16e   : > { %v769_v10 = vcombine.low %v761_v8, %v768_v19 }
 0x170   : > { %787 = vst [vmem:[%s262_s30] sm:$0xff] %v769_v10 }
 0x171 PF: > { %s13_s14 = sadd.s32 1, %s1026_s14   ;;  %s1195_s12 = smov %s1022_s13 }
 0x172   : > { %p10_p5 = scmp.ge.s32.totalorder %s13_s14, 4   ;;  %s1196_s13 = smov %s1198_s15 }
 0x174   :  { %12 = sbr.rel (!%p10_p5) target bundleno = 2 (0x2), region = 76 }

// kernel: saff_forward.3
= control target key start
LH: loop header
LB: loop body
LE: loop exit
PB: predicated region body
PF: predicated region fallthrough
CT: control target
= control target key end

     0   :  { %v38_v30 = vlaneseq  ;;  %v2033_v34 = vmov 1983009808   ;;  %vm86_vm0 = vcmask 1041408   ;;  %s2513_s0 = inlined_call_operand.vmem [shape: f32[2,1280], index: 0, kind: input, shape index: {}]   ;;  %s2514_s1 = inlined_call_operand.vmem [shape: f32[1,1280], index: 1, kind: input, shape index: {}]   ;;  %s2515_s2 = inlined_call_operand.vmem [shape: f32[1,1280], index: 2, kind: input, shape index: {}]   ;;  %s2516_s3 = inlined_call_operand.vmem [shape: bf16[1280,128], index: 3, kind: input, shape index: {}]   ;;  %s2517_s4 = inlined_call_operand.vmem [shape: f32[1,128], index: 4, kind: input, shape index: {}]   ;;  %s2518_s5 = inlined_call_operand.vmem [shape: bf16[128,128], index: 5, kind: input, shape index: {}]   ;;  %s2519_s6 = inlined_call_operand.vmem [shape: f32[1,128], index: 6, kind: input, shape index: {}]   ;;  %s2520_s7 = inlined_call_operand.hbm [shape: f32[2,128], index: 7, kind: output, shape index: {}]  }
   0x1   :  { %v1899_v0 = vld [vmem:[%s2516_s3 + $0x40] sm:$0xff]   ;;  %v1903_v4 = vld [vmem:[%s2516_s3 + $0x48] sm:$0xff]   ;;  %v1907_v8 = vld [vmem:[%s2516_s3 + $0x50] sm:$0xff]   ;;  %v36_v35 = vunpack.c.l.s4 %v2033_v34 }
   0x2   :  { %v1900_v1 = vld [vmem:[%s2516_s3] sm:$0xff]   ;;  %1756 = vmatprep.subr.bf16.mxu0 %v1899_v0  ;;  %v1904_v5 = vld [vmem:[%s2516_s3 + $0x8] sm:$0xff]   ;;  %v1908_v9 = vld [vmem:[%s2516_s3 + $0x10] sm:$0xff]   ;;  %v2176_v36 = vshrl.u32 %v38_v30, 7 }
   0x3   :  { %v1901_v2 = vld [vmem:[%s2516_s3 + $0xc0] sm:$0xff]   ;;  %1757 = vmatpush3.bf16.msra.mxu0 %v1900_v1  ;;  %v1905_v6 = vld [vmem:[%s2516_s3 + $0xc8] sm:$0xff]   ;;  %v1909_v10 = vld [vmem:[%s2516_s3 + $0xd0] sm:$0xff]   ;;  %v37_v39 = vunpack.c.0.s8 %v36_v35 }
   0x4   :  { %v1902_v3 = vld [vmem:[%s2516_s3 + $0x80] sm:$0xff]   ;;  %1778 = vmatprep.subr.bf16.mxu1 %v1901_v2  ;;  %1758 = vmatprep.subr.bf16.mxu0 %v1903_v4  ;;  %v1906_v7 = vld [vmem:[%s2516_s3 + $0x88] sm:$0xff]   ;;  %v1910_v11 = vld [vmem:[%s2516_s3 + $0x90] sm:$0xff]  }
   0x5   :  { %1779 = vmatpush3.bf16.msra.mxu1 %v1902_v3  ;;  %v1911_v12 = vld [vmem:[%s2516_s3 + $0x58] sm:$0xff]   ;;  %v1915_v16 = vld [vmem:[%s2516_s3 + $0x60] sm:$0xff]   ;;  %v1919_v20 = vld [vmem:[%s2516_s3 + $0x68] sm:$0xff]   ;;  %v2185_v41 = vsub.s32 %v37_v39, %v2176_v36 }
   0x6   :  { %1780 = vmatprep.subr.bf16.mxu1 %v1905_v6  ;;  %v1912_v13 = vld [vmem:[%s2516_s3 + $0x18] sm:$0xff]   ;;  %v1916_v17 = vld [vmem:[%s2516_s3 + $0x20] sm:$0xff]   ;;  %v1920_v21 = vld [vmem:[%s2516_s3 + $0x28] sm:$0xff]  }
   0x7   :  { %1759 = vmatpush3.bf16.msra.mxu0 %v1904_v5  ;;  %v1913_v14 = vld [vmem:[%s2516_s3 + $0xd8] sm:$0xff]   ;;  %v1917_v18 = vld [vmem:[%s2516_s3 + $0xe0] sm:$0xff]   ;;  %v1921_v22 = vld [vmem:[%s2516_s3 + $0xe8] sm:$0xff]  }
   0x8   :  { %1760 = vmatprep.subr.bf16.mxu0 %v1907_v8  ;;  %v1914_v15 = vld [vmem:[%s2516_s3 + $0x98] sm:$0xff]   ;;  %v1918_v19 = vld [vmem:[%s2516_s3 + $0xa0] sm:$0xff]   ;;  %v1922_v23 = vld [vmem:[%s2516_s3 + $0xa8] sm:$0xff]  }
   0x9   :  { %1781 = vmatpush3.bf16.msra.mxu1 %v1906_v7  ;;  %v1923_v24 = vld [vmem:[%s2516_s3 + $0x70] sm:$0xff]   ;;  %v1927_v28 = vld [vmem:[%s2516_s3 + $0x78] sm:$0xff]   ;;  %v28_v33 = vld [vmem:[%s2513_s0] sm:$0xff] }
   0xa   :  { %1782 = vmatprep.subr.bf16.mxu1 %v1909_v10  ;;  %v1924_v25 = vld [vmem:[%s2516_s3 + $0x30] sm:$0xff]   ;;  %v1928_v29 = vld [vmem:[%s2516_s3 + $0x38] sm:$0xff]   ;;  %v1932_v37 = vld [vmem:[%s2516_s3 + $0x140] sm:$0xff]   ;;  %v34_v38 = vcombine.high %v28_v33, %v28_v33  ;;  %v41_v42 = vrot.slane %v28_v33, %v2185_v41 }
   0xb   :  { %1761 = vmatpush3.bf16.msra.mxu0 %v1908_v9  ;;  %v1925_v26 = vld [vmem:[%s2516_s3 + $0xf0] sm:$0xff]   ;;  %v1929_v31 = vld [vmem:[%s2516_s3 + $0xf8] sm:$0xff]   ;;  %v1934_v40 = vld [vmem:[%s2516_s3 + $0x1c0] sm:$0xff]  }
   0xc   :  { %1762 = vmatprep.subr.bf16.mxu0 %v1911_v12  ;;  %v1926_v27 = vld [vmem:[%s2516_s3 + $0xb0] sm:$0xff]   ;;  %v1930_v32 = vld [vmem:[%s2516_s3 + $0xb8] sm:$0xff]   ;;  %v48_v43 = vrot.slane %v34_v38, %v2185_v41  ;;  %v49_v44 = vcombine.high %v41_v42, %v41_v42  ;;  %v87_v46 = vsel %vm86_vm0, %v41_v42, 0.0 }
   0xd   :  { %1783 = vmatpush3.bf16.msra.mxu1 %v1910_v11  ;;  %v88_v48 = vrot.slane %v87_v46, 4 }
   0xe   :  { %1784 = vmatprep.subr.bf16.mxu1 %v1913_v14  ;;  %v50_v45 = vcombine.high %v48_v43, %v48_v43  ;;  %v101_v47 = vsel %vm86_vm0, %v48_v43, 0.0  ;;  %v94_v50 = vsel %vm86_vm0, %v49_v44, 0.0 }
   0xf   :  { %1763 = vmatpush3.bf16.msra.mxu0 %v1912_v13  ;;  %v102_v49 = vrot.slane %v101_v47, 4  ;;  %v89_v52 = vadd.f32 %v88_v48, %v87_v46  ;;  %v95_v53 = vrot.slane %v94_v50, 4 }
  0x10   :  { %1764 = vmatprep.subr.bf16.mxu0 %v1915_v16  ;;  %v108_v51 = vsel %vm86_vm0, %v50_v45, 0.0 }
  0x11   :  { %1785 = vmatpush3.bf16.msra.mxu1 %v1914_v15  ;;  %v103_v54 = vadd.f32 %v102_v49, %v101_v47  ;;  %v109_v55 = vrot.slane %v108_v51, 4  ;;  %v90_v56 = vrot.slane %v89_v52, 2  ;;  %v96_v57 = vadd.f32 %v95_v53, %v94_v50 }
  0x12   :  { %1786 = vmatprep.subr.bf16.mxu1 %v1917_v18 }
  0x13   :  { %1765 = vmatpush3.bf16.msra.mxu0 %v1916_v17  ;;  %v104_v58 = vrot.slane %v103_v54, 2  ;;  %v110_v59 = vadd.f32 %v109_v55, %v108_v51  ;;  %v91_v60 = vadd.f32 %v90_v56, %v89_v52  ;;  %v97_v61 = vrot.slane %v96_v57, 2 }
  0x14   :  { %1766 = vmatprep.subr.bf16.mxu0 %v1919_v20  ;;  %v2200_v20 = vld [vmem:[%s2513_s0 + $0x8] sm:$0xff] }
  0x15   :  { %1787 = vmatpush3.bf16.msra.mxu1 %v1918_v19  ;;  %v105_v62 = vadd.f32 %v104_v58, %v103_v54  ;;  %v111_v63 = vrot.slane %v110_v59, 2  ;;  %v92_v0 = vrot.slane %v91_v60, 1  ;;  %v98_v1 = vadd.f32 %v97_v61, %v96_v57 }
  0x16   :  { %1788 = vmatprep.subr.bf16.mxu1 %v1921_v22  ;;  %v58_v22 = vrot.slane %v2200_v20, %v2185_v41 }
  0x17   :  { %1767 = vmatpush3.bf16.msra.mxu0 %v1920_v21  ;;  %v106_v2 = vrot.slane %v105_v62, 1  ;;  %v112_v3 = vadd.f32 %v111_v63, %v110_v59  ;;  %v93_v4 = vadd.f32 %v92_v0, %v91_v60  ;;  %v99_v5 = vrot.slane %v98_v1, 1 }
  0x18   :  { %1768 = vmatprep.subr.bf16.mxu0 %v1923_v24  ;;  %v51_v21 = vcombine.high %v2200_v20, %v2200_v20  ;;  %v2209_v24 = vsub.s32 0, %v2176_v36 }
  0x19   :  { %1789 = vmatpush3.bf16.msra.mxu1 %v1922_v23  ;;  %v107_v6 = vadd.f32 %v106_v2, %v105_v62  ;;  %v113_v7 = vrot.slane %v112_v3, 1  ;;  %v100_v8 = vadd.f32 %v99_v5, %v98_v1  ;;  %v158_v10 = vmul.f32 0.5, %v93_v4 }
  0x1a   :  { %1790 = vmatprep.subr.bf16.mxu1 %v1925_v26  ;;  %v65_v26 = vrot.slane %v51_v21, %v2185_v41 }
  0x1b   :  { %1769 = vmatpush3.bf16.msra.mxu0 %v1924_v25  ;;  %v114_v9 = vadd.f32 %v113_v7, %v112_v3  ;;  %v160_v11 = vmul.f32 0.5, %v107_v6  ;;  %v159_v12 = vmul.f32 0.5, %v100_v8  ;;  %v2212_v25 = vsub.s32 1, %v2176_v36 }
  0x1c   :  { %1770 = vmatprep.subr.bf16.mxu0 %v1927_v28  ;;  %v115_v28 = vsel %vm86_vm0, %v58_v22, 0.0  ;;  %v129_v35 = vsel %vm86_vm0, %v65_v26, 0.0 }
  0x1d   :  { %1791 = vmatpush3.bf16.msra.mxu1 %v1926_v27  ;;  %v161_v13 = vmul.f32 0.5, %v114_v9  ;;  %v178_v14 = vcombine.low %v158_v10, %v159_v12  ;;  %v66_v27 = vcombine.high %v58_v22, %v58_v22  ;;  %v130_v44 = vrot.slane %v129_v35, 4 }
  0x1e   :  { %1792 = vmatprep.subr.bf16.mxu1 %v1929_v31  ;;  %v456_v31 = vsub.s32 2, %v2176_v36 }
  0x1f   :  { %1771 = vmatpush3.bf16.msra.mxu0 %v1928_v29  ;;  %v179_v15 = vcombine.low %v160_v11, %v161_v13  ;;  %v186_v16 = vrot.slane %v178_v14, %v2185_v41  ;;  %v122_v34 = vsel %vm86_vm0, %v66_v27, 0.0  ;;  %v131_v56 = vadd.f32 %v130_v44, %v129_v35  ;;  %v2230_v35 = vld [vmem:[%s2514_s1] sm:$0xff] }
  0x20   :  { %1800 = vmatprep.subr.bf16.mxu0 %v1932_v37  ;;  %v123_v43 = vrot.slane %v122_v34, 4  ;;  %v460_v14 = vsub.s32 3, %v2176_v36 }
  0x21   :  { %1793 = vmatpush3.bf16.msra.mxu1 %v1930_v32  ;;  %v193_v17 = vrot.slane %v179_v15, %v2185_v41  ;;  %v116_v32 = vrot.slane %v115_v28, 4  ;;  %v132_v0 = vrot.slane %v131_v56, 2 }
  0x22   :  { %1822 = vmatprep.subr.bf16.mxu1 %v1934_v40  ;;  %v124_v53 = vadd.f32 %v123_v43, %v122_v34 }
  0x23   :  { %v194_v18 = vcombine.low %v186_v16, %v193_v17  ;;  %v117_v40 = vadd.f32 %v116_v32, %v115_v28  ;;  %v133_v8 = vadd.f32 %v132_v0, %v131_v56 }
  0x24   :  { %v125_v63 = vrot.slane %v124_v53, 2 }
  0x25   :  { %v2195_v19 = vsub.f32 %v28_v33, %v194_v18  ;;  %v67_v33 = vcombine.high %v65_v26, %v65_v26  ;;  %v118_v49 = vrot.slane %v117_v40, 2  ;;  %v134_v16 = vrot.slane %v133_v8, 1 }
  0x26   :  { %v126_v7 = vadd.f32 %v125_v63, %v124_v53  ;;  %v2244_v53 = vld [vmem:[%s2515_s2] sm:$0xff] }
  0x27   :  { %v226_v23 = vmul.f32 %v2195_v19, %v2195_v19  ;;  %v136_v45 = vsel %vm86_vm0, %v67_v33, 0.0  ;;  %v119_v55 = vadd.f32 %v118_v49, %v117_v40  ;;  %v135_v27 = vadd.f32 %v134_v16, %v133_v8 }
  0x28   :  { %v137_v57 = vrot.slane %v136_v45, 4  ;;  %v127_v15 = vrot.slane %v126_v7, 1  ;;  %v541_v63 = vrot.slane %v2244_v53, %v2209_v24  ;;  %v545_v0 = vrot.slane %v2244_v53, %v2212_v25 }
  0x29   :  { %v232_v29 = vcombine.high %v226_v23, %v226_v23  ;;  %v239_v30 = vrot.slane %v226_v23, %v2185_v41  ;;  %v120_v62 = vrot.slane %v119_v55, 1 }
  0x2a   :  { %v138_v1 = vadd.f32 %v137_v57, %v136_v45  ;;  %v128_v26 = vadd.f32 %v127_v15, %v126_v7  ;;  %v449_v45 = vrot.slane %v2230_v35, %v2209_v24 }
  0x2b   :  { %v246_v37 = vrot.slane %v232_v29, %v2185_v41  ;;  %v247_v38 = vcombine.high %v239_v30, %v239_v30  ;;  %v284_v39 = vsel %vm86_vm0, %v239_v30, 0.0  ;;  %v121_v6 = vadd.f32 %v120_v62, %v119_v55 }
  0x2c   :  { %v285_v42 = vrot.slane %v284_v39, 4  ;;  %v139_v9 = vrot.slane %v138_v1, 2 }
  0x2d   :  { %v248_v46 = vcombine.high %v246_v37, %v246_v37  ;;  %v291_v47 = vsel %vm86_vm0, %v247_v38, 0.0  ;;  %v298_v48 = vsel %vm86_vm0, %v246_v37, 0.0  ;;  %v162_v29 = vmul.f32 0.5, %v121_v6 }
  0x2e   :  { %v286_v50 = vadd.f32 %v285_v42, %v284_v39  ;;  %v292_v51 = vrot.slane %v291_v47, 4  ;;  %v299_v52 = vrot.slane %v298_v48, 4  ;;  %v140_v17 = vadd.f32 %v139_v9, %v138_v1 }
  0x2f   :  { %v305_v54 = vsel %vm86_vm0, %v248_v46, 0.0  ;;  %v163_v38 = vmul.f32 0.5, %v128_v26  ;;  %v164_v39 = vmul.f32 0.5, %v135_v27 }
  0x30   :  { %v287_v58 = vrot.slane %v286_v50, 2  ;;  %v293_v59 = vadd.f32 %v292_v51, %v291_v47  ;;  %v300_v60 = vadd.f32 %v299_v52, %v298_v48  ;;  %v306_v61 = vrot.slane %v305_v54, 4  ;;  %v2237_v48 = vld [vmem:[%s2513_s0 + $0x10] sm:$0xf] }
  0x31   :  { %v141_v28 = vrot.slane %v140_v17, 1  ;;  %v195_v47 = vcombine.low %v162_v29, %v163_v38  ;;  %v453_v52 = vrot.slane %v2230_v35, %v2212_v25  ;;  %v74_v56 = vrot.slane %v2237_v48, %v2185_v41 }
  0x32   :  { %v288_v2 = vadd.f32 %v287_v58, %v286_v50  ;;  %v294_v3 = vrot.slane %v293_v59, 2  ;;  %v301_v4 = vrot.slane %v300_v60, 2  ;;  %v307_v5 = vadd.f32 %v306_v61, %v305_v54 }
  0x33   :  { %v142_v37 = vadd.f32 %v141_v28, %v140_v17  ;;  %v203_v55 = vrot.slane %v195_v47, %v2185_v41  ;;  %v457_v58 = vrot.slane %v2230_v35, %v456_v31  ;;  %v75_v61 = vcombine.high %v74_v56, %v74_v56 }
  0x34   :  { %v289_v10 = vrot.slane %v288_v2, 1  ;;  %v295_v11 = vadd.f32 %v294_v3, %v293_v59  ;;  %v302_v12 = vadd.f32 %v301_v4, %v300_v60  ;;  %v308_v13 = vrot.slane %v307_v5, 2 }
  0x35   :  { %v165_v46 = vmul.f32 0.5, %v142_v37  ;;  %v461_v59 = vrot.slane %v2230_v35, %v460_v14  ;;  %v143_v62 = vsel %vm86_vm0, %v74_v56, 0.0  ;;  %v150_v3 = vsel %vm86_vm0, %v75_v61, 0.0 }
  0x36   :  { %v290_v18 = vadd.f32 %v289_v10, %v288_v2  ;;  %v296_v21 = vrot.slane %v295_v11, 1  ;;  %v303_v22 = vrot.slane %v302_v12, 1  ;;  %v309_v23 = vadd.f32 %v308_v13, %v307_v5 }
  0x37   :  { %v196_v54 = vcombine.low %v164_v39, %v165_v46  ;;  %v144_v1 = vrot.slane %v143_v62, 4  ;;  %v549_v4 = vrot.slane %v2244_v53, %v456_v31  ;;  %v553_v5 = vrot.slane %v2244_v53, %v460_v14 }
  0x38   :  { %v297_v30 = vadd.f32 %v296_v21, %v295_v11  ;;  %v304_v32 = vadd.f32 %v303_v22, %v302_v12  ;;  %v310_v33 = vrot.slane %v309_v23, 1  ;;  %v354_v34 = vmul.f32 0.5, %v290_v18 }
  0x39   :  { %v210_v60 = vrot.slane %v196_v54, %v2185_v41  ;;  %v145_v6 = vadd.f32 %v144_v1, %v143_v62  ;;  %v151_v7 = vrot.slane %v150_v3, 4  ;;  %v486_v8 = vcombine.low %v449_v45, %v453_v52 }
  0x3a   :  { %v311_v40 = vadd.f32 %v310_v33, %v309_v23  ;;  %v355_v42 = vmul.f32 0.5, %v297_v30  ;;  %v356_v43 = vmul.f32 0.5, %v304_v32  ;;  %v364_v44 = vadd.f32 1e-05, %v354_v34 }
  0x3b   :  { %v211_v2 = vcombine.low %v203_v55, %v210_v60  ;;  %v487_v10 = vcombine.low %v457_v58, %v461_v59  ;;  %v578_v11 = vcombine.low %v541_v63, %v545_v0  ;;  %v146_v12 = vrot.slane %v145_v6, 2 }
  0x3c   :  { %v357_v49 = vmul.f32 0.5, %v311_v40  ;;  %v365_v50 = vadd.f32 1e-05, %v355_v42  ;;  %v366_v51 = vadd.f32 1e-05, %v356_v43  ;;  %1989 = vrsqrt.f32 %v364_v44 }
  0x3d   :  { %v2265_v9 = vsub.f32 %v2200_v20, %v211_v2  ;;  %v152_v13 = vadd.f32 %v151_v7, %v150_v3 }
  0x3e   :  { %v367_v57 = vadd.f32 1e-05, %v357_v49  ;;  %1991 = vrsqrt.f32 %v365_v50 }
  0x3f   :  { %1993 = vrsqrt.f32 %v366_v51 }
  0x40   :  { %1995 = vrsqrt.f32 %v367_v57 }
  0x41   :  { %12 = vsyncpa [#allocation3], 0  ;;  %v227_v15 = vmul.f32 %v2265_v9, %v2265_v9  ;;  %v579_v17 = vcombine.low %v549_v4, %v553_v5  ;;  %v147_v18 = vadd.f32 %v146_v12, %v145_v6  ;;  %v153_v31 = vrot.slane %v152_v13, 2  ;;  %s2036_s20 = smov [#allocation2]  }
  0x42   :  { %v494_v14 = vrot.slane %v486_v8, %v2185_v41  ;;  %v501_v20 = vrot.slane %v487_v10, %v2185_v41  ;;  %v586_v26 = vrot.slane %v578_v11, %v2185_v41  ;;  %vm2035_vm1 = vmmov 0   ;;  %s1658_s21 = sshll.u32 %s2036_s20, 4  ;;  %s1659_s21 = int_to_ptr.vmem [resolvable:$true] %s1658_s21 }
  0x43   :  { %v249_v21 = vcombine.high %v227_v15, %v227_v15  ;;  %v256_v22 = vrot.slane %v227_v15, %v2185_v41  ;;  %v148_v27 = vrot.slane %v147_v18, 1  ;;  %v154_v28 = vadd.f32 %v153_v31, %v152_v13  ;;  %s2009_s22 = scalar_lea.vmem %s1659_s21, 32  ;;  %p2014_p1 = scmp.lt.s32.totalorder %s1659_s21, %s1659_s21 }
  0x44   :  { %v593_v38 = vrot.slane %v579_v17, %v2185_v41  ;;  %v502_v62 = vcombine.low %v494_v14, %v501_v20  ;;  %v464_v15 = vsub.s32 4, %v2176_v36  ;;  %p2010_p0 = scmp.ne.s32.totalorder %s1659_s21, %s2009_s22  ;;  %p2015_p2 = scmp.lt.s32.totalorder %s2009_s22, %s2009_s22 }
  0x45   :  { %v263_v32 = vrot.slane %v249_v21, %v2185_v41  ;;  %v264_v33 = vcombine.high %v256_v22, %v256_v22  ;;  %v312_v34 = vsel %vm86_vm0, %v256_v22, 0.0  ;;  %v149_v40 = vadd.f32 %v148_v27, %v147_v18 }
  0x46   :  { %v1990_v16 = vpop.eup %1989  ;;  %v313_v39 = vrot.slane %v312_v34, 4  ;;  %v155_v42 = vrot.slane %v154_v28, 1  ;;  %v594_v5 = vcombine.low %v586_v26, %v593_v38  ;;  %v472_v22 = vsub.s32 6, %v2176_v36  ;;  %p2016_p3 = por %p2015_p2, %p2014_p1 }
  0x47   :  { %v265_v45 = vcombine.high %v263_v32, %v263_v32  ;;  %v319_v46 = vsel %vm86_vm0, %v264_v33, 0.0  ;;  %v326_v50 = vsel %vm86_vm0, %v263_v32, 0.0  ;;  %v166_v56 = vmul.f32 0.5, %v149_v40 }
  0x48   :  { %v1992_v23 = vpop.eup %1991  ;;  %v314_v47 = vadd.f32 %v313_v39, %v312_v34  ;;  %v320_v49 = vrot.slane %v319_v46, 4  ;;  %v156_v51 = vadd.f32 %v155_v42, %v154_v28  ;;  %v327_v54 = vrot.slane %v326_v50, 4  ;;  %p2017_p4 = pnand %p2016_p3, %p2010_p0 }
  0x49   :  { %v1994_v29 = vpop.eup %1993  ;;  %v394_v30 = vcombine.low %v1990_v16, %v1992_v23  ;;  %v333_v55 = vsel %vm86_vm0, %v265_v45, 0.0  ;;  %v476_v32 = vsub.s32 7, %v2176_v36 }
  0x4a   :  { %v1996_v37 = vpop.eup %1995  ;;  %v315_v57 = vrot.slane %v314_v47, 2  ;;  %v321_v58 = vadd.f32 %v320_v49, %v319_v46  ;;  %v334_v59 = vrot.slane %v333_v55, 4  ;;  %v167_v60 = vmul.f32 0.5, %v156_v51 }
  0x4b   :  { %v395_v43 = vcombine.low %v1994_v29, %v1996_v37  ;;  %v402_v44 = vrot.slane %v394_v30, %v2185_v41  ;;  %v328_v63 = vadd.f32 %v327_v54, %v326_v50 }
  0x4c   :  { %v316_v0 = vadd.f32 %v315_v57, %v314_v47  ;;  %v322_v1 = vrot.slane %v321_v58, 2  ;;  %v335_v2 = vadd.f32 %v334_v59, %v333_v55  ;;  %v212_v3 = vcombine.low %v166_v56, %v167_v60  ;;  %v1933_v47 = vld [vmem:[%s2516_s3 + $0x100] sm:$0xff]  }
  0x4d   :  { %v409_v52 = vrot.slane %v395_v43, %v2185_v41  ;;  %v329_v6 = vrot.slane %v328_v63, 2 }
  0x4e   :  { %v317_v7 = vrot.slane %v316_v0, 1  ;;  %v323_v8 = vadd.f32 %v322_v1, %v321_v58  ;;  %v336_v10 = vrot.slane %v335_v2, 2  ;;  %v219_v11 = vrot.slane %v212_v3, %v2185_v41  ;;  %v1935_v58 = vld [vmem:[%s2516_s3 + $0x180] sm:$0xff]  }
  0x4f   :  { %v410_v61 = vcombine.low %v402_v44, %v409_v52  ;;  %v330_v13 = vadd.f32 %v329_v6, %v328_v63  ;;  %v1936_v52 = vld [vmem:[%s2516_s3 + $0x148] sm:$0xff]   ;;  %v465_v63 = vrot.slane %v2230_v35, %v464_v15 }
  0x50   :  { %v318_v16 = vadd.f32 %v317_v7, %v316_v0  ;;  %v324_v17 = vrot.slane %v323_v8, 1  ;;  %v337_v18 = vadd.f32 %v336_v10, %v335_v2  ;;  %v2285_v31 = vsub.f32 %v2237_v48, %v219_v11  ;;  %v1940_v2 = vld [vmem:[%s2516_s3 + $0x150] sm:$0xff]   ;;  %v1939_v6 = vld [vmem:[%s2516_s3 + $0x188] sm:$0xff]  }
  0x51   :  { %v439_v4 = vmul.f32 %v410_v61, %v2195_v19  ;;  %v331_v21 = vrot.slane %v330_v13, 1  ;;  %v468_v19 = vsub.s32 5, %v2176_v36  ;;  %v1938_v61 = vld [vmem:[%s2516_s3 + $0x1c8] sm:$0xff]   ;;  %v1942_v10 = vld [vmem:[%s2516_s3 + $0x1d0] sm:$0xff]   ;;  %v557_v11 = vrot.slane %v2244_v53, %v464_v15  ;;  %v1944_v36 = vld [vmem:[%s2516_s3 + $0x158] sm:$0xff]  }
  0x52   :  { %v325_v23 = vadd.f32 %v324_v17, %v323_v8  ;;  %v338_v20 = vrot.slane %v337_v18, 1  ;;  %v358_v26 = vmul.f32 0.5, %v318_v16  ;;  %v228_v27 = vmul.f32 %v2285_v31, %v2285_v31 }
  0x53   :  { %v531_v12 = vmul.f32 %v502_v62, %v439_v4  ;;  %v332_v30 = vadd.f32 %v331_v21, %v330_v13  ;;  %v1937_v62 = vld [vmem:[%s2516_s3 + $0x108] sm:$0xff]   ;;  %v469_v3 = vrot.slane %v2230_v35, %v468_v19  ;;  %v473_v4 = vrot.slane %v2230_v35, %v472_v22 }
  0x54   :  { %v339_v48 = vadd.f32 %v338_v20, %v337_v18  ;;  %v359_v33 = vmul.f32 0.5, %v325_v23  ;;  %v368_v34 = vadd.f32 1e-05, %v358_v26  ;;  %v272_v37 = vrot.slane %v228_v27, %v2185_v41 }
  0x55   :  { %v623_v14 = vadd.f32 %v594_v5, %v531_v12  ;;  %v360_v42 = vmul.f32 0.5, %v332_v30  ;;  %v477_v5 = vrot.slane %v2230_v35, %v476_v32  ;;  %v561_v12 = vrot.slane %v2244_v53, %v468_v19  ;;  %v1941_v35 = vld [vmem:[%s2516_s3 + $0x110] sm:$0xff]  }
  0x56   :  { %v361_v43 = vmul.f32 0.5, %v339_v48  ;;  %v369_v44 = vadd.f32 1e-05, %v359_v33  ;;  %1997 = vrsqrt.f32 %v368_v34  ;;  %v273_v45 = vcombine.high %v272_v37, %v272_v37  ;;  %v1943_v19 = vld [vmem:[%s2516_s3 + $0x190] sm:$0xff]   ;;  %v1948_v34 = vld [vmem:[%s2516_s3 + $0x160] sm:$0xff]  }
  0x57   :  { %v636_v28 = vrot.slane %v623_v14, %v2185_v41  ;;  %v629_v29 = vcombine.high %v623_v14, %v623_v14  ;;  %v370_v51 = vadd.f32 1e-05, %v360_v42  ;;  %v340_v55 = vsel %vm86_vm0, %v272_v37, 0.0 }
  0x58   :  { %v371_v54 = vadd.f32 1e-05, %v361_v43  ;;  %1999 = vrsqrt.f32 %v369_v44  ;;  %v347_v56 = vsel %vm86_vm0, %v273_v45, 0.0  ;;  %v341_v59 = vrot.slane %v340_v55, 4  ;;  %v1950_v45 = vld [vmem:[%s2516_s3 + $0x1e0] sm:$0xff]  }
  0x59   :  { %v644_v38 = vcombine.high %v636_v28, %v636_v28  ;;  %v681_v39 = vpack.c.bf16 %v636_v28, %v636_v28  ;;  %v643_v40 = vrot.slane %v629_v29, %v2185_v41  ;;  %2001 = vrsqrt.f32 %v370_v51  ;;  %v1945_v28 = vld [vmem:[%s2516_s3 + $0x118] sm:$0xff]  }
  0x5a   :  { %v348_v60 = vrot.slane %v347_v56, 4  ;;  %2003 = vrsqrt.f32 %v371_v54  ;;  %v342_v0 = vadd.f32 %v341_v59, %v340_v55  ;;  %v565_v13 = vrot.slane %v2244_v53, %v472_v22  ;;  %v1952_v54 = vld [vmem:[%s2516_s3 + $0x168] sm:$0xff]   ;;  %v1951_v55 = vld [vmem:[%s2516_s3 + $0x1a0] sm:$0xff]  }
  0x5b   :  { %v682_v46 = vpack.c.bf16 %v644_v38, %v644_v38  ;;  %v645_v49 = vcombine.high %v643_v40, %v643_v40  ;;  %v683_v50 = vpack.c.bf16 %v643_v40, %v643_v40  ;;  %v569_v16 = vrot.slane %v2244_v53, %v476_v32  ;;  %v1946_v53 = vld [vmem:[%s2516_s3 + $0x1d8] sm:$0xff]   ;;  %v1953_v59 = vld [vmem:[%s2516_s3 + $0x128] sm:$0xff]  }
  0x5c   :  { %v349_v1 = vadd.f32 %v348_v60, %v347_v56  ;;  %v343_v7 = vrot.slane %v342_v0, 2  ;;  %v503_v15 = vcombine.low %v465_v63, %v469_v3  ;;  %v504_v21 = vcombine.low %v473_v4, %v477_v5  ;;  %v443_v63 = vld [vmem:[%s2514_s1 + $0x8] sm:$0x3]  ;;  %v1957_v3 = vld [vmem:[%s2516_s3 + $0x130] sm:$0xff]  }
  0x5d   :  { %1370 = vmatprep.mubr.bf16.mxu0 %v682_v46  ;;  %v684_v57 = vpack.c.bf16 %v645_v49, %v645_v49  ;;  %v595_v26 = vcombine.low %v557_v11, %v561_v12  ;;  %v596_v30 = vcombine.low %v565_v13, %v569_v16  ;;  %v481_v5 = vrot.slane %v443_v63, %v2209_v24  ;;  %v1962_v13 = vld [vmem:[%s2516_s3 + $0x1f8] sm:$0xff]  }
  0x5e   :  { %1371 = vmatmul.mubr.bf16.vlgmr.msra.gmra.mrb[0].mxu0 %v681_v39  ;;  %v350_v8 = vrot.slane %v349_v1, 2  ;;  %v344_v17 = vadd.f32 %v343_v7, %v342_v0  ;;  %v511_v37 = vrot.slane %v503_v15, %v2185_v41  ;;  %v518_v38 = vrot.slane %v504_v21, %v2185_v41  ;;  %v1947_v39 = vld [vmem:[%s2516_s3 + $0x198] sm:$0xff]   ;;  %v1955_v0 = vld [vmem:[%s2516_s3 + $0x1a8] sm:$0xff]  }
  0x5f   :  { %1801 = vmatpush3.bf16.msra.mxu0 %v1933_v47  ;;  %1410 = vmatprep.mubr.bf16.mxu1 %v684_v57  ;;  %v603_v46 = vrot.slane %v595_v26, %v2185_v41  ;;  %v1949_v47 = vld [vmem:[%s2516_s3 + $0x120] sm:$0xff]   ;;  %v1960_v7 = vld [vmem:[%s2516_s3 + $0x178] sm:$0xff]  }
  0x60   :  { %1411 = vmatmul.mubr.bf16.vlgmr.msra.gmra.mrb[0].mxu1 %v683_v50  ;;  %1802 = vmatprep.subr.bf16.mxu0 %v1936_v52  ;;  %v351_v18 = vadd.f32 %v350_v8, %v349_v1  ;;  %v1998_v14 = vpop.eup %1997  ;;  %v345_v23 = vrot.slane %v344_v17, 1  ;;  %v610_v50 = vrot.slane %v596_v30, %v2185_v41  ;;  %v519_v57 = vcombine.low %v511_v37, %v518_v38  ;;  %v1959_v8 = vld [vmem:[%s2516_s3 + $0x1b0] sm:$0xff]   ;;  %v1964_v21 = vld [vmem:[%s2516_s3 + $0x1b8] sm:$0xff]   ;;  %v1966_v26 = vld [vmem:[%s2516_s3 + $0x200] sm:$0xff]  }
  0x61   :  { %1823 = vmatpush3.bf16.msra.mxu1 %v1935_v58  ;;  %v1954_v58 = vld [vmem:[%s2516_s3 + $0x1e8] sm:$0xff]   ;;  %v1969_v37 = vld [vmem:[%s2516_s3 + $0x250] sm:$0xff]  }
  0x62   :  { %1824 = vmatprep.subr.bf16.mxu1 %v1938_v61  ;;  %v352_v20 = vrot.slane %v351_v18, 1  ;;  %v2000_v22 = vpop.eup %1999  ;;  %v346_v32 = vadd.f32 %v345_v23, %v344_v17  ;;  %v611_v61 = vcombine.low %v603_v46, %v610_v50  ;;  %v1961_v17 = vld [vmem:[%s2516_s3 + $0x138] sm:$0xff]   ;;  %v1967_v30 = vld [vmem:[%s2516_s3 + $0x248] sm:$0xff]   ;;  %v1978_v50 = vld [vmem:[%s2516_s3 + $0x230] sm:$0xff]  }
  0x63   :  { %1803 = vmatpush3.bf16.msra.mxu0 %v1937_v62  ;;  %v2002_v27 = vpop.eup %2001  ;;  %v411_v29 = vcombine.low %v1998_v14, %v2000_v22  ;;  %v1956_v62 = vld [vmem:[%s2516_s3 + $0x170] sm:$0xff]   ;;  %v1975_v46 = vld [vmem:[%s2516_s3 + $0x268] sm:$0xff]  }
  0x64   :  { %1804 = vmatprep.subr.bf16.mxu0 %v1940_v2  ;;  %v353_v48 = vadd.f32 %v352_v20, %v351_v18  ;;  %v2004_v33 = vpop.eup %2003  ;;  %v362_v43 = vmul.f32 0.5, %v346_v32  ;;  %v535_v2 = vld [vmem:[%s2515_s2 + $0x8] sm:$0x3] }
  0x65   :  { %1825 = vmatpush3.bf16.msra.mxu1 %v1939_v6  ;;  %v412_v40 = vcombine.low %v2002_v27, %v2004_v33  ;;  %v419_v42 = vrot.slane %v411_v29, %v2185_v41  ;;  %v485_v6 = vrot.slane %v443_v63, %v2212_v25  ;;  %v573_v12 = vrot.slane %v535_v2, %v2209_v24  ;;  %v1965_v24 = vld [vmem:[%s2516_s3 + $0x240] sm:$0xff]   ;;  %v1968_v33 = vld [vmem:[%s2516_s3 + $0x208] sm:$0xff]   ;;  %v1988_v63 = vld [vmem:[%s2518_s5 + $0x38] sm:$0xff]  }
  0x66   :  { %1826 = vmatprep.subr.bf16.mxu1 %v1942_v10  ;;  %v363_v44 = vmul.f32 0.5, %v353_v48  ;;  %v372_v51 = vadd.f32 1e-05, %v362_v43  ;;  %v1972_v43 = vld [vmem:[%s2516_s3 + $0x218] sm:$0xff]  }
  0x67   :  { %1805 = vmatpush3.bf16.msra.mxu0 %v1941_v35  ;;  %v426_v49 = vrot.slane %v412_v40, %v2185_v41  ;;  %v577_v35 = vrot.slane %v535_v2, %v2212_v25  ;;  %v1971_v40 = vld [vmem:[%s2516_s3 + $0x258] sm:$0xff]  }
  0x68   :  { %1806 = vmatprep.subr.bf16.mxu0 %v1944_v36  ;;  %v373_v52 = vadd.f32 1e-05, %v363_v44  ;;  %2005 = vrsqrt.f32 %v372_v51  ;;  %v520_v36 = vcombine.low %v481_v5, %v485_v6  ;;  %v1979_v51 = vld [vmem:[%s2516_s3 + $0x278] sm:$0xff]  }
  0x69   :  { %1827 = vmatpush3.bf16.msra.mxu1 %v1943_v19  ;;  %v427_v56 = vcombine.low %v419_v42, %v426_v49  ;;  %v612_v20 = vcombine.low %v573_v12, %v577_v35  ;;  %v1977_v49 = vld [vmem:[%s2516_s3 + $0x270] sm:$0xff]  }
  0x6a   :  { %1828 = vmatprep.subr.bf16.mxu1 %v1946_v53  ;;  %2007 = vrsqrt.f32 %v373_v52  ;;  %v1980_v52 = vld [vmem:[%s2516_s3 + $0x238] sm:$0xff]  }
  0x6b   :  { %1807 = vmatpush3.bf16.msra.mxu0 %v1945_v28  ;;  %v440_v60 = vmul.f32 %v427_v56, %v2265_v9  ;;  %v1958_v9 = vld [vmem:[%s2516_s3 + $0x1f0] sm:$0xff]   ;;  %v527_v28 = vrot.slane %v520_v36, %v2185_v41  ;;  %v619_v48 = vrot.slane %v612_v20, %v2185_v41  ;;  %v2034_v56 = vmov 0.0  }
  0x6c   :  { %1808 = vmatprep.subr.bf16.mxu0 %v1948_v34 }
  0x6d   :  { %1829 = vmatpush3.bf16.msra.mxu1 %v1947_v39  ;;  %v532_v1 = vmul.f32 %v519_v57, %v440_v60  ;;  %v1982_v57 = vld [vmem:[%s2518_s5 + $0x8] sm:$0xff]   ;;  %v1985_v60 = vld [vmem:[%s2518_s5 + $0x20] sm:$0xff]  }
  0x6e   :  { %1830 = vmatprep.subr.bf16.mxu1 %v1950_v45  ;;  %v1973_v45 = vld [vmem:[%s2516_s3 + $0x260] sm:$0xff]  }
  0x6f   :  { %1809 = vmatpush3.bf16.msra.mxu0 %v1949_v47  ;;  %v624_v4 = vadd.f32 %v611_v61, %v532_v1  ;;  %v1976_v47 = vld [vmem:[%s2516_s3 + $0x228] sm:$0xff]   ;;  %v1666_v1 = vld [vmem:[%s2517_s4] ss:$0 sm:$0xff] }
  0x70   :  { %1810 = vmatprep.subr.bf16.mxu0 %v1952_v54  ;;  %v1986_v61 = vld [vmem:[%s2518_s5 + $0x28] sm:$0xff]  }
  0x71   :  { %1831 = vmatpush3.bf16.msra.mxu1 %v1951_v55  ;;  %v653_v10 = vrot.slane %v624_v4, %v2185_v41  ;;  %v646_v11 = vcombine.high %v624_v4, %v624_v4  ;;  %v1981_v55 = vld [vmem:[%s2518_s5] sm:$0xff]  }
  0x72   :  { %1832 = vmatprep.subr.bf16.mxu1 %v1954_v58  ;;  %v2006_v16 = vpop.eup %2005  ;;  %v1983_v58 = vld [vmem:[%s2518_s5 + $0x10] sm:$0xff]  }
  0x73   :  { %1811 = vmatpush3.bf16.msra.mxu0 %v1953_v59  ;;  %v661_v18 = vcombine.high %v653_v10, %v653_v10  ;;  %v660_v14 = vrot.slane %v646_v11, %v2185_v41  ;;  %v685_v22 = vpack.c.bf16 %v653_v10, %v653_v10  ;;  %v1984_v59 = vld [vmem:[%s2518_s5 + $0x18] sm:$0xff]  }
  0x74   :  { %1812 = vmatprep.subr.bf16.mxu0 %v1956_v62  ;;  %v2008_v15 = vpop.eup %2007  ;;  %v1987_v62 = vld [vmem:[%s2518_s5 + $0x30] sm:$0xff]  }
  0x75   :  { %1833 = vmatpush3.bf16.msra.mxu1 %v1955_v0  ;;  %v686_v25 = vpack.c.bf16 %v661_v18, %v661_v18  ;;  %v662_v19 = vcombine.high %v660_v14, %v660_v14  ;;  %v428_v23 = vcombine.low %v2006_v16, %v2008_v15  ;;  %v687_v29 = vpack.c.bf16 %v660_v14, %v660_v14 }
  0x76   :  { %1834 = vmatprep.subr.bf16.mxu1 %v1958_v9 }
  0x77   :  { %1813 = vmatpush3.bf16.msra.mxu0 %v1957_v3  ;;  %1450 = vmatprep.mubr.bf16.mxu0 %v686_v25  ;;  %v688_v53 = vpack.c.bf16 %v662_v19, %v662_v19  ;;  %v435_v27 = vrot.slane %v428_v23, %v2185_v41 }
  0x78   :  { %1814 = vmatprep.subr.bf16.mxu0 %v1960_v7 }
  0x79   :  { %1835 = vmatpush3.bf16.msra.mxu1 %v1959_v8  ;;  %1490 = vmatprep.mubr.bf16.mxu1 %v688_v53  ;;  %v441_v32 = vmul.f32 %v435_v27, %v2285_v31  ;;  %v1970_v31 = vld [vmem:[%s2516_s3 + $0x210] sm:$0xff]  }
  0x7a   :  { %1836 = vmatprep.subr.bf16.mxu1 %v1962_v13 }
  0x7b   :  { %1815 = vmatpush3.bf16.msra.mxu0 %v1961_v17  ;;  %v533_v34 = vmul.f32 %v527_v28, %v441_v32 }
  0x7c   :  { %1844 = vmatprep.subr.bf16.mxu0 %v1965_v24 }
  0x7d   :  { %1837 = vmatpush3.bf16.msra.mxu1 %v1964_v21  ;;  %v625_v38 = vadd.f32 %v619_v48, %v533_v34 }
  0x7e   :  { %1451 = vmatmul.mubr.bf16.vlgmr.msra.gmra.mrb[4].mxu0 %v685_v22  ;;  %1875 = vmatprep.subr.bf16.mxu1 %v2034_v56 }
  0x7f   :  { %1845 = vmatpush3.bf16.msra.mxu0 %v1966_v26  ;;  %v669_v39 = vrot.slane %v625_v38, %v2185_v41  ;;  %v1974_v41 = vld [vmem:[%s2516_s3 + $0x220] sm:$0xff]  }
  0x80   :  { %1491 = vmatmul.mubr.bf16.vlgmr.msra.gmra.mrb[4].mxu1 %v687_v29  ;;  %1846 = vmatprep.subr.bf16.mxu0 %v1967_v30  ;;  %v1747_v30 = vld [vmem:[%s2519_s6] ss:$0 sm:$0xff] }
  0x81   :  { %v670_v42 = vcombine.high %v669_v39, %v669_v39  ;;  %v689_v54 = vpack.c.bf16 %v669_v39, %v669_v39  ;;  %1876 = vmatpush3.bf16.msra.mxu1 %v1981_v55  ;;  %1891 = vmatprep.mubr.msk.bf16.mxu1 %vm2035_vm1, %v2034_v56 }
  0x82   :  { %1877 = vmatprep.subr.bf16.mxu1 %v2034_v56 }
  0x83   :  { %1847 = vmatpush3.bf16.msra.mxu0 %v1968_v33  ;;  %v690_v44 = vpack.c.bf16 %v670_v42, %v670_v42 }
  0x84   :  { %1848 = vmatprep.subr.bf16.mxu0 %v1969_v37 }
  0x85   :  { %1530 = vmatprep.mubr.bf16.mxu0 %v690_v44  ;;  %1878 = vmatpush3.bf16.msra.mxu1 %v1982_v57 }
  0x86   :  { %1879 = vmatprep.subr.bf16.mxu1 %v2034_v56 }
  0x87   :  { %1849 = vmatpush3.bf16.msra.mxu0 %v1970_v31 }
  0x88   :  { %1850 = vmatprep.subr.bf16.mxu0 %v1971_v40 }
  0x89   :  { %1880 = vmatpush3.bf16.msra.mxu1 %v1983_v58 }
  0x8a   :  { %1881 = vmatprep.subr.bf16.mxu1 %v2034_v56 }
  0x8b   :  { %1851 = vmatpush3.bf16.msra.mxu0 %v1972_v43 }
  0x8c   :  { %1852 = vmatprep.subr.bf16.mxu0 %v1973_v45 }
  0x8d   :  { %1882 = vmatpush3.bf16.msra.mxu1 %v1984_v59 }
  0x8e   :  { %1883 = vmatprep.subr.bf16.mxu1 %v2034_v56 }
  0x8f   :  { %1853 = vmatpush3.bf16.msra.mxu0 %v1974_v41 }
  0x90   :  { %1854 = vmatprep.subr.bf16.mxu0 %v1975_v46 }
  0x91   :  { %1884 = vmatpush3.bf16.msra.mxu1 %v1985_v60 }
  0x92   :  { %1885 = vmatprep.subr.bf16.mxu1 %v2034_v56 }
  0x93   :  { %1855 = vmatpush3.bf16.msra.mxu0 %v1976_v47 }
  0x94   :  { %1856 = vmatprep.subr.bf16.mxu0 %v1977_v49 }
  0x95   :  { %1886 = vmatpush3.bf16.msra.mxu1 %v1986_v61 }
  0x96   :  { %1887 = vmatprep.subr.bf16.mxu1 %v2034_v56 }
  0x97   :  { %1857 = vmatpush3.bf16.msra.mxu0 %v1978_v50 }
  0x98   :  { %1858 = vmatprep.subr.bf16.mxu0 %v1979_v51 }
  0x99   :  { %1888 = vmatpush3.bf16.msra.mxu1 %v1987_v62 }
  0x9a   :  { %1889 = vmatprep.subr.bf16.mxu1 %v2034_v56 }
  0x9b   :  { %1859 = vmatpush3.bf16.msra.mxu0 %v1980_v52 }
  0x9d   :  { %1890 = vmatpush3.bf16.msra.mxu1 %v1988_v63 }
  0x9e   :  { %1531 = vmatmul.mubr.bf16.vlgmr.msra.gmra.mrb[8].mxu0 %v689_v54 }
 0x131   :  { %v1772_v0 = vpop.f32.mrb[0].mxu0 }
 0x132   :  { %v1773_v9 = vpop.f32.mrb[1].mxu0 }
 0x133   :  { %v1774_v2 = vadd.f32 %v1773_v9, %v1772_v0  ;;  %v1775_v3 = vpop.f32.mrb[2].mxu0  ;;  %v1794_v4 = vpop.f32.mrb[0].mxu1 }
 0x134   :  { %v1776_v5 = vpop.f32.mrb[3].mxu0  ;;  %v1795_v6 = vpop.f32.mrb[1].mxu1 }
 0x135   :  { %v1373_v7 = vadd.f32 %v1774_v2, %v1666_v1  ;;  %v1796_v8 = vadd.f32 %v1795_v6, %v1794_v4  ;;  %v1797_v10 = vpop.f32.mrb[2].mxu1 }
 0x136   :  { %v1798_v11 = vpop.f32.mrb[3].mxu1 }
 0x137   :  { %v1413_v12 = vadd.f32 %v1796_v8, %v1373_v7 }
 0x151   :  { %v1816_v35 = vpop.f32.mrb[4].mxu0 }
 0x152   :  { %v1817_v13 = vpop.f32.mrb[5].mxu0 }
 0x153   :  { %v1818_v16 = vadd.f32 %v1817_v13, %v1816_v35  ;;  %v1819_v17 = vpop.f32.mrb[6].mxu0  ;;  %v1838_v18 = vpop.f32.mrb[4].mxu1 }
 0x154   :  { %v1820_v14 = vpop.f32.mrb[7].mxu0  ;;  %v1839_v36 = vpop.f32.mrb[5].mxu1 }
 0x155   :  { %v1453_v15 = vadd.f32 %v1818_v16, %v1413_v12  ;;  %v1840_v24 = vadd.f32 %v1839_v36, %v1838_v18  ;;  %v1841_v25 = vpop.f32.mrb[6].mxu1 }
 0x156   :  { %v1842_v21 = vpop.f32.mrb[7].mxu1 }
 0x157   :  { %v1493_v19 = vadd.f32 %v1840_v24, %v1453_v15 }
 0x171   :  { %v1860_v23 = vpop.f32.mrb[8].mxu0 }
 0x172   :  { %v1861_v20 = vpop.f32.mrb[9].mxu0 }
 0x173   :  { %v1862_v22 = vadd.f32 %v1861_v20, %v1860_v23  ;;  %v1863_v53 = vpop.f32.mrb[10].mxu0 }
 0x174   :  { %v1864_v26 = vpop.f32.mrb[11].mxu0 }
 0x175   :  { %v1533_v27 = vadd.f32 %v1862_v22, %v1493_v19 }
 0x177   :  { %v1538_v28 = vmax.f32 %v1533_v27, 0.0 }
 0x179   :  { %v1539_v29 = vpack.c.bf16 %v1538_v28, %v1538_v28 }
 0x17b   :  { %1892 = vmatmul.mubr.bf16.vlgmr.msra.gmra.mrb[8].mxu1 %v1539_v29 }
 0x24e   :  { %v1645_v32 = vpop.f32.mrb[8].mxu1 }
 0x24f   :  { %v1646_v48 = vadd.f32 %v1747_v30, %v1645_v32  ;;  %v1893_v33 = vpop.f32.mrb[9].mxu1 }
 0x250   :  { %v1648_v34 = vpop.f32.mrb[10].mxu1 }
 0x251   :  { %1651 = vst [vmem:[#allocation2] sm:$0x3] %v1646_v48  ;;  %v1894_v37 = vpop.f32.mrb[11].mxu1 }
 0x252   :  { %2020 = shalt.err (!%p2017_p4)
}
 0x253   :  { %s2021_s6 = scalar_lea.hbm %s2520_s7, 32 }
 0x254   :  { %p2022_p5 = scmp.ne.s32.totalorder %s2520_s7, %s2021_s6  ;;  %p2025_p6 = scmp.lt.u32.totalorder %s2021_s6, %s2520_s7 }
 0x256   :  { %p2027_p7 = pnand %p2025_p6, %p2022_p5 }
 0x258   :  { %2030 = shalt.err (!%p2027_p7)
}
 0x259   :  { %1661 = dma.vmem_to_hbm [thread:$0]  %s1659_s21, 32, %s2520_s7, [#allocation3]  }
 0x25a   :  { %2031 = dma.done.wait [#allocation3], 32  }
 0x25b   :  { %2032 = vsyncadd [#allocation3], 4294967264 }
 0x25c   :  { %1665 = vsyncpa [#allocation3], 1 }

</bundles_post_ra>
